<compile_context>
chip_gen: v6e
topology: v6e:2x2x1
jax: 0.10.0
libtpu: 0.0.40
codegen_flags: <defaults>
</compile_context>

<pallas_src>
import math

import jax
import jax.numpy as jnp
from jax.experimental import pallas as pl
from jax.experimental.pallas import tpu as pltpu


# --------------------------------------------------------------------------------------
# small math helpers (used inside kernels, f32)
# --------------------------------------------------------------------------------------
def _layernorm(x, eps=1e-6):
    # elementwise_affine=False LayerNorm over the last axis (biased variance).
    mean = jnp.mean(x, axis=-1, keepdims=True)
    var = jnp.mean(jnp.square(x - mean), axis=-1, keepdims=True)
    return (x - mean) * jax.lax.rsqrt(var + eps)


def _gelu_tanh(x):
    # GELU with tanh approximation (matches nn.GELU(approximate='tanh')).
    c = math.sqrt(2.0 / math.pi)
    return 0.5 * x * (1.0 + jnp.tanh(c * (x + 0.044715 * x * x * x)))


def _pick_seq_tile(L, target=256):
    """Largest sequence tile <= target that divides L and is a multiple of 8 (or L)."""
    if L <= target:
        return L
    t = target - (target % 8)
    while t >= 8:
        if L % t == 0:
            return t
        t -= 8
    return L


# --------------------------------------------------------------------------------------
# kernel 1: LN1 + adaLN modulate + QKV projection, head-major q/k/v outputs
# --------------------------------------------------------------------------------------
def make_qkv_kernel(D, H):
    hd = D // H

    def kernel(x_ref, shift_ref, scale_ref, w_ref, b_ref, q_ref, k_ref, v_ref):
        x = x_ref[0].astype(jnp.float32)              # (T, D)
        shift = shift_ref[0].astype(jnp.float32)      # (1, D)
        scale = scale_ref[0].astype(jnp.float32)      # (1, D)

        h = _layernorm(x) * (1.0 + scale) + shift     # modulate (f32)
        qkv = jnp.dot(h.astype(jnp.bfloat16), w_ref[...],
                      preferred_element_type=jnp.float32) + b_ref[...]   # (T, 3D) f32
        qkv = qkv.astype(jnp.bfloat16)

        # Scatter into head-major layout with static-slice stores (no concatenate,
        # no in-kernel transpose op).
        for hh in range(H):
            q_ref[0, hh, :, :] = qkv[:, 0 * D + hh * hd: 0 * D + (hh + 1) * hd]
            k_ref[0, hh, :, :] = qkv[:, 1 * D + hh * hd: 1 * D + (hh + 1) * hd]
            v_ref[0, hh, :, :] = qkv[:, 2 * D + hh * hd: 2 * D + (hh + 1) * hd]

    return kernel


# --------------------------------------------------------------------------------------
# kernel 2: attention (query tile vs full K/V, heads batched) + proj + residual
#           + LN2 + modulate + MLP + residual
# --------------------------------------------------------------------------------------
def make_attn_mlp_kernel(D, H):
    hd = D // H
    sm_scale = hd ** -0.5

    def kernel(x_ref, q_ref, k_ref, v_ref,
               gate_attn_ref, shift_mlp_ref, scale_mlp_ref, gate_mlp_ref,
               proj_w_ref, proj_b_ref, fc1_w_ref, fc1_b_ref, fc2_w_ref, fc2_b_ref,
               out_ref, attn_scratch):
        x = x_ref[0].astype(jnp.float32)              # (T, D)
        q = q_ref[0]                                  # (H, T, hd)  bf16
        k = k_ref[0]                                  # (H, L, hd)  bf16
        v = v_ref[0]                                  # (H, L, hd)  bf16

        # --- multi-head attention, heads as leading batch dim (no transposes) ---
        s = jnp.einsum('hqd,hkd->hqk', q, k,
                       preferred_element_type=jnp.float32) * sm_scale     # (H, T, L) f32
        m = jnp.max(s, axis=-1, keepdims=True)
        p = jnp.exp(s - m)
        denom = jnp.sum(p, axis=-1, keepdims=True)                        # (H, T, 1)
        o = jnp.einsum('hqk,hkd->hqd', p.astype(jnp.bfloat16), v,
                       preferred_element_type=jnp.float32)                # (H, T, hd) f32
        o = o * pl.reciprocal(denom, approx=True)

        # merge heads -> (T, D) via static-slice stores into VMEM scratch
        for hh in range(H):
            attn_scratch[:, hh * hd:(hh + 1) * hd] = o[hh]

        attn = jnp.dot(attn_scratch[...].astype(jnp.bfloat16), proj_w_ref[...],
                       preferred_element_type=jnp.float32) + proj_b_ref[...]   # (T, D)

        gate_attn = gate_attn_ref[0].astype(jnp.float32)
        x1 = x + gate_attn * attn

        # --- MLP branch ---
        shift_mlp = shift_mlp_ref[0].astype(jnp.float32)
        scale_mlp = scale_mlp_ref[0].astype(jnp.float32)
        gate_mlp = gate_mlp_ref[0].astype(jnp.float32)

        h2 = _layernorm(x1) * (1.0 + scale_mlp) + shift_mlp
        m1 = jnp.dot(h2.astype(jnp.bfloat16), fc1_w_ref[...],
                     preferred_element_type=jnp.float32) + fc1_b_ref[...]
        m1 = _gelu_tanh(m1)
        m2 = jnp.dot(m1.astype(jnp.bfloat16), fc2_w_ref[...],
                     preferred_element_type=jnp.float32) + fc2_b_ref[...]

        out_ref[0] = (x1 + gate_mlp * m2).astype(out_ref.dtype)

    return kernel


# --------------------------------------------------------------------------------------
# wrapper
# --------------------------------------------------------------------------------------
def _forward(x, cond, params, num_heads, single_buffer_weights):
    B, L, D = x.shape
    (qkv_w, qkv_b, proj_w, proj_b,
     fc1_w, fc1_b, fc2_w, fc2_b,
     ada_w, ada_b) = params
    H = num_heads
    hd = D // H
    Hm = fc1_w.shape[1]

    T = _pick_seq_tile(L)
    NT = L // T

    # ---- adaLN modulation in plain XLA: keeps the (D, 6D) weight out of VMEM ----
    c0 = cond[:, 0:1, :].astype(jnp.float32)                  # (B, 1, D)
    silu = c0 * jax.nn.sigmoid(c0)
    ada = jnp.dot(silu, ada_w) + ada_b                        # (B, 1, 6D)
    (shift_attn, scale_attn, gate_attn,
     shift_mlp, scale_mlp, gate_mlp) = jnp.split(ada, 6, axis=-1)

    # bf16 weights for the MXU; biases stay f32 (accumulated in f32).
    qkv_w_b = qkv_w.astype(jnp.bfloat16)
    proj_w_b = proj_w.astype(jnp.bfloat16)
    fc1_w_b = fc1_w.astype(jnp.bfloat16)
    fc2_w_b = fc2_w.astype(jnp.bfloat16)

    def const_spec(shape):
        # Grid-invariant operand: request single buffering to halve weight VMEM.
        idx = lambda b, i: (0,) * len(shape)
        if single_buffer_weights:
            return pl.BlockSpec(shape, idx, pipeline_mode=pl.Buffered(1))
        return pl.BlockSpec(shape, idx)

    def mod_spec():
        return pl.BlockSpec((1, 1, D), lambda b, i: (b, 0, 0))

    cparams = pltpu.CompilerParams(
        dimension_semantics=("parallel", "parallel"),
        vmem_limit_bytes=48 * 1024 * 1024,   # headroom under v7x's 64 MiB
    )

    # ---- kernel 1: LN1 + modulate + QKV projection ----
    qkv_cost = pl.CostEstimate(
        flops=2 * B * L * D * 3 * D,
        transcendentals=0,
        bytes_accessed=4 * B * L * D + 2 * D * 3 * D + 3 * 2 * B * L * D,
    )
    q_h, k_h, v_h = pl.pallas_call(
        make_qkv_kernel(D, H),
        out_shape=(jax.ShapeDtypeStruct((B, H, L, hd), jnp.bfloat16),) * 3,
        grid=(B, NT),
        in_specs=[
            pl.BlockSpec((1, T, D), lambda b, i: (b, i, 0)),      # x tile
            mod_spec(), mod_spec(),                                # shift/scale attn
            const_spec((D, 3 * D)), const_spec((1, 3 * D)),        # qkv weight/bias
        ],
        out_specs=(pl.BlockSpec((1, H, T, hd), lambda b, i: (b, 0, i, 0)),) * 3,
        compiler_params=cparams,
        cost_estimate=qkv_cost,
    )(x, shift_attn, scale_attn, qkv_w_b, qkv_b)

    # ---- kernel 2: attention + proj + residual + LN2 + modulate + MLP + residual ----
    attn_mlp_cost = pl.CostEstimate(
        flops=B * (4 * L * L * D + 2 * L * D * D + 4 * L * D * Hm),
        transcendentals=B * (H * L * L + L * Hm),
        bytes_accessed=(2 * 4 * B * L * D + 3 * 2 * B * L * D
                        + 2 * (D * D + 2 * D * Hm)),
    )
    out = pl.pallas_call(
        make_attn_mlp_kernel(D, H),
        out_shape=jax.ShapeDtypeStruct((B, L, D), x.dtype),
        grid=(B, NT),
        in_specs=[
            pl.BlockSpec((1, T, D), lambda b, i: (b, i, 0)),          # x tile (residual)
            pl.BlockSpec((1, H, T, hd), lambda b, i: (b, 0, i, 0)),   # q tile (head-major)
            pl.BlockSpec((1, H, L, hd), lambda b, i: (b, 0, 0, 0)),   # k full
            pl.BlockSpec((1, H, L, hd), lambda b, i: (b, 0, 0, 0)),   # v full
            mod_spec(), mod_spec(), mod_spec(), mod_spec(),           # gates/shift/scale
            const_spec((D, D)), const_spec((1, D)),                   # proj
            const_spec((D, Hm)), const_spec((1, Hm)),                 # fc1
            const_spec((Hm, D)), const_spec((1, D)),                  # fc2
        ],
        out_specs=pl.BlockSpec((1, T, D), lambda b, i: (b, i, 0)),    # lane-dense for real D
        scratch_shapes=[pltpu.VMEM((T, D), jnp.float32)],
        compiler_params=cparams,
        cost_estimate=attn_mlp_cost,
    )(x, q_h, k_h, v_h,
      gate_attn, shift_mlp, scale_mlp, gate_mlp,
      proj_w_b, proj_b, fc1_w_b, fc1_b, fc2_w_b, fc2_b)

    return out


def vision_transformer_block(x, cond, params, num_heads):
    """x: (B, L, D), cond: (B, Lc, D). Returns (out, cond) like the torch module
    (concat_cond=False path)."""
    # TODO(synk): concat_cond=True path (cat/split along sequence) is pure glue and is
    # not exercised here; the default concat_cond=False forward is implemented.
    try:
        out = _forward(x, cond, params, num_heads, single_buffer_weights=True)
        jax.block_until_ready(out)
    except Exception:
        # Fallback if this runtime rejects pipeline_mode=pl.Buffered(1).
        out = _forward(x, cond, params, num_heads, single_buffer_weights=False)
    return out, cond


def init_params(key, feature_dim, mlp_factor=4.0):
    """Deterministic synthetic parameters. All Linear weights stored as (in, out)."""
    D = feature_dim
    Hm = int(D * mlp_factor)
    ks = jax.random.split(key, 10)
    s = 0.02

    qkv_w = s * jax.random.normal(ks[0], (D, 3 * D), jnp.float32)
    qkv_b = s * jax.random.normal(ks[1], (1, 3 * D), jnp.float32)
    proj_w = s * jax.random.normal(ks[2], (D, D), jnp.float32)
    proj_b = s * jax.random.normal(ks[3], (1, D), jnp.float32)
    fc1_w = s * jax.random.normal(ks[4], (D, Hm), jnp.float32)
    fc1_b = s * jax.random.normal(ks[5], (1, Hm), jnp.float32)
    fc2_w = s * jax.random.normal(ks[6], (Hm, D), jnp.float32)
    fc2_b = s * jax.random.normal(ks[7], (1, D), jnp.float32)
    ada_w = s * jax.random.normal(ks[8], (D, 6 * D), jnp.float32)
    ada_b = s * jax.random.normal(ks[9], (1, 6 * D), jnp.float32)
    return (qkv_w, qkv_b, proj_w, proj_b,
            fc1_w, fc1_b, fc2_w, fc2_b,
            ada_w, ada_b)


if __name__ == "__main__":
    # Small shapes consistent with the module: batch=2, seq=8, feature_dim=32, 4 heads.
    # (Toy D=32 is not lane-dense; real DiT D=1152 maps cleanly to 128-lane vregs.)
    B, L, Lc, D, heads = 2, 8, 8, 32, 4
    key = jax.random.PRNGKey(0)
    kx, kc, kp = jax.random.split(key, 3)

    x = jax.random.normal(kx, (B, L, D), jnp.float32)
    cond = jax.random.normal(kc, (B, Lc, D), jnp.float32)
    params = init_params(kp, D, mlp_factor=4.0)

    out, cond_out = vision_transformer_block(x, cond, params, heads)
    jax.block_until_ready(out)
    jax.block_until_ready(cond_out)

    assert out.shape == (B, L, D) and cond_out.shape == (B, Lc, D)
    print("KERNEL_OK")
</pallas_src>

<mosaic_0001>
module attributes {stable_mosaic.version = 11 : i64} {
  func.func @kernel(%arg0: i32, %arg1: i32, %arg2: memref<1x8x32xf32, #tpu.memory_space<vmem>>, %arg3: memref<1x1x32xf32, #tpu.memory_space<vmem>>, %arg4: memref<1x1x32xf32, #tpu.memory_space<vmem>>, %arg5: memref<32x96xbf16, #tpu.memory_space<vmem>>, %arg6: memref<1x96xf32, #tpu.memory_space<vmem>>, %arg7: memref<1x4x8x8xbf16, #tpu.memory_space<vmem>>, %arg8: memref<1x4x8x8xbf16, #tpu.memory_space<vmem>>, %arg9: memref<1x4x8x8xbf16, #tpu.memory_space<vmem>>) attributes {dimension_semantics = [#tpu.dimension_semantics<parallel>, #tpu.dimension_semantics<parallel>], iteration_bounds = array<i64: 2, 1>, scalar_prefetch = 0 : i64, scratch_operands = 0 : i64, tpu.core_type = #tpu.core_type<tc>, window_params = [{transform_indices = @transform_0, window_bounds = array<i64: 1, 8, 32>}, {transform_indices = @transform_1, window_bounds = array<i64: 1, 1, 32>}, {transform_indices = @transform_2, window_bounds = array<i64: 1, 1, 32>}, {pipeline_mode = #tpu.pipeline_mode<synchronous>, transform_indices = @transform_3, window_bounds = array<i64: 32, 96>}, {pipeline_mode = #tpu.pipeline_mode<synchronous>, transform_indices = @transform_4, window_bounds = array<i64: 1, 96>}, {transform_indices = @transform_5, window_bounds = array<i64: 1, 4, 8, 8>}, {transform_indices = @transform_6, window_bounds = array<i64: 1, 4, 8, 8>}, {transform_indices = @transform_7, window_bounds = array<i64: 1, 4, 8, 8>}]} {
    %c0 = arith.constant 0 : index
    %c0_0 = arith.constant 0 : index
    %c0_1 = arith.constant 0 : index
    %0 = vector.load %arg2[%c0, %c0_0, %c0_1] : memref<1x8x32xf32, #tpu.memory_space<vmem>>, vector<1x8x32xf32>
    %1 = vector.shape_cast %0 : vector<1x8x32xf32> to vector<8x32xf32>
    %c0_2 = arith.constant 0 : index
    %c0_3 = arith.constant 0 : index
    %c0_4 = arith.constant 0 : index
    %2 = vector.load %arg3[%c0_2, %c0_3, %c0_4] : memref<1x1x32xf32, #tpu.memory_space<vmem>>, vector<1x1x32xf32>
    %3 = vector.shape_cast %2 : vector<1x1x32xf32> to vector<1x32xf32>
    %c0_5 = arith.constant 0 : index
    %c0_6 = arith.constant 0 : index
    %c0_7 = arith.constant 0 : index
    %4 = vector.load %arg4[%c0_5, %c0_6, %c0_7] : memref<1x1x32xf32, #tpu.memory_space<vmem>>, vector<1x1x32xf32>
    %5 = vector.shape_cast %4 : vector<1x1x32xf32> to vector<1x32xf32>
    %cst = arith.constant dense<0.000000e+00> : vector<8xf32>
    %6 = vector.multi_reduction <add>, %1, %cst [1] : vector<8x32xf32> to vector<8xf32>
    %7 = vector.shape_cast %6 : vector<8xf32> to vector<8x1xf32>
    %cst_8 = arith.constant 3.200000e+01 : f32
    %8 = vector.broadcast %cst_8 : f32 to vector<8x1xf32>
    %9 = arith.divf %7, %8 : vector<8x1xf32>
    %10 = vector.broadcast %9 : vector<8x1xf32> to vector<8x32xf32>
    %11 = arith.subf %1, %10 : vector<8x32xf32>
    %12 = arith.mulf %11, %11 : vector<8x32xf32>
    %cst_9 = arith.constant dense<0.000000e+00> : vector<8xf32>
    %13 = vector.multi_reduction <add>, %12, %cst_9 [1] : vector<8x32xf32> to vector<8xf32>
    %14 = vector.shape_cast %13 : vector<8xf32> to vector<8x1xf32>
    %cst_10 = arith.constant 3.200000e+01 : f32
    %15 = vector.broadcast %cst_10 : f32 to vector<8x1xf32>
    %16 = arith.divf %14, %15 : vector<8x1xf32>
    %17 = vector.broadcast %9 : vector<8x1xf32> to vector<8x32xf32>
    %18 = arith.subf %1, %17 : vector<8x32xf32>
    %cst_11 = arith.constant 9.99999997E-7 : f32
    %19 = vector.broadcast %cst_11 : f32 to vector<8x1xf32>
    %20 = arith.addf %16, %19 : vector<8x1xf32>
    %21 = math.rsqrt %20 : vector<8x1xf32>
    %22 = vector.broadcast %21 : vector<8x1xf32> to vector<8x32xf32>
    %23 = arith.mulf %18, %22 : vector<8x32xf32>
    %cst_12 = arith.constant 1.000000e+00 : f32
    %24 = vector.broadcast %cst_12 : f32 to vector<1x32xf32>
    %25 = arith.addf %24, %5 : vector<1x32xf32>
    %26 = vector.broadcast %25 : vector<1x32xf32> to vector<8x32xf32>
    %27 = arith.mulf %23, %26 : vector<8x32xf32>
    %28 = vector.broadcast %3 : vector<1x32xf32> to vector<8x32xf32>
    %29 = arith.addf %27, %28 : vector<8x32xf32>
    %30 = arith.truncf %29 : vector<8x32xf32> to vector<8x32xbf16>
    %c0_13 = arith.constant 0 : index
    %c0_14 = arith.constant 0 : index
    %31 = vector.load %arg5[%c0_13, %c0_14] : memref<32x96xbf16, #tpu.memory_space<vmem>>, vector<32x96xbf16>
    %cst_15 = arith.constant dense<0.000000e+00> : vector<8x96xf32>
    %32 = tpu.matmul %30, %31, %cst_15 {dimension_numbers = #tpu.dot_dimension_numbers<[1], [0], [0], [1], [0, 0, 1, 1], [], []>} : vector<8x32xbf16>, vector<32x96xbf16>, vector<8x96xf32> -> vector<8x96xf32>
    %c0_16 = arith.constant 0 : index
    %c0_17 = arith.constant 0 : index
    %33 = vector.load %arg6[%c0_16, %c0_17] : memref<1x96xf32, #tpu.memory_space<vmem>>, vector<1x96xf32>
    %34 = vector.broadcast %33 : vector<1x96xf32> to vector<8x96xf32>
    %35 = arith.addf %32, %34 : vector<8x96xf32>
    %36 = arith.truncf %35 : vector<8x96xf32> to vector<8x96xbf16>
    %37 = vector.extract_strided_slice %36 {offsets = [0, 0], sizes = [8, 8], strides = [1, 1]} : vector<8x96xbf16> to vector<8x8xbf16>
    %c0_18 = arith.constant 0 : index
    %c0_19 = arith.constant 0 : index
    %c0_20 = arith.constant 0 : index
    %c0_21 = arith.constant 0 : index
    %38 = vector.load %arg7[%c0_18, %c0_19, %c0_20, %c0_21] : memref<1x4x8x8xbf16, #tpu.memory_space<vmem>>, vector<1x1x8x8xbf16>
    %39 = vector.shape_cast %38 : vector<1x1x8x8xbf16> to vector<8x8xbf16>
    %40 = vector.shape_cast %37 : vector<8x8xbf16> to vector<1x1x8x8xbf16>
    tpu.vector_store %arg7[%c0_18, %c0_19, %c0_20, %c0_21], %40 {strides = array<i32>} : memref<1x4x8x8xbf16, #tpu.memory_space<vmem>>, vector<1x1x8x8xbf16>,
    %41 = vector.extract_strided_slice %36 {offsets = [0, 32], sizes = [8, 8], strides = [1, 1]} : vector<8x96xbf16> to vector<8x8xbf16>
    %c0_22 = arith.constant 0 : index
    %c0_23 = arith.constant 0 : index
    %c0_24 = arith.constant 0 : index
    %c0_25 = arith.constant 0 : index
    %42 = vector.load %arg8[%c0_22, %c0_23, %c0_24, %c0_25] : memref<1x4x8x8xbf16, #tpu.memory_space<vmem>>, vector<1x1x8x8xbf16>
    %43 = vector.shape_cast %42 : vector<1x1x8x8xbf16> to vector<8x8xbf16>
    %44 = vector.shape_cast %41 : vector<8x8xbf16> to vector<1x1x8x8xbf16>
    tpu.vector_store %arg8[%c0_22, %c0_23, %c0_24, %c0_25], %44 {strides = array<i32>} : memref<1x4x8x8xbf16, #tpu.memory_space<vmem>>, vector<1x1x8x8xbf16>,
    %45 = vector.extract_strided_slice %36 {offsets = [0, 64], sizes = [8, 8], strides = [1, 1]} : vector<8x96xbf16> to vector<8x8xbf16>
    %c0_26 = arith.constant 0 : index
    %c0_27 = arith.constant 0 : index
    %c0_28 = arith.constant 0 : index
    %c0_29 = arith.constant 0 : index
    %46 = vector.load %arg9[%c0_26, %c0_27, %c0_28, %c0_29] : memref<1x4x8x8xbf16, #tpu.memory_space<vmem>>, vector<1x1x8x8xbf16>
    %47 = vector.shape_cast %46 : vector<1x1x8x8xbf16> to vector<8x8xbf16>
    %48 = vector.shape_cast %45 : vector<8x8xbf16> to vector<1x1x8x8xbf16>
    tpu.vector_store %arg9[%c0_26, %c0_27, %c0_28, %c0_29], %48 {strides = array<i32>} : memref<1x4x8x8xbf16, #tpu.memory_space<vmem>>, vector<1x1x8x8xbf16>,
    %49 = vector.extract_strided_slice %36 {offsets = [0, 8], sizes = [8, 8], strides = [1, 1]} : vector<8x96xbf16> to vector<8x8xbf16>
    %c0_30 = arith.constant 0 : index
    %c1 = arith.constant 1 : index
    %c0_31 = arith.constant 0 : index
    %c0_32 = arith.constant 0 : index
    %50 = vector.load %arg7[%c0_30, %c1, %c0_31, %c0_32] : memref<1x4x8x8xbf16, #tpu.memory_space<vmem>>, vector<1x1x8x8xbf16>
    %51 = vector.shape_cast %50 : vector<1x1x8x8xbf16> to vector<8x8xbf16>
    %52 = vector.shape_cast %49 : vector<8x8xbf16> to vector<1x1x8x8xbf16>
    tpu.vector_store %arg7[%c0_30, %c1, %c0_31, %c0_32], %52 {strides = array<i32>} : memref<1x4x8x8xbf16, #tpu.memory_space<vmem>>, vector<1x1x8x8xbf16>,
    %53 = vector.extract_strided_slice %36 {offsets = [0, 40], sizes = [8, 8], strides = [1, 1]} : vector<8x96xbf16> to vector<8x8xbf16>
    %c0_33 = arith.constant 0 : index
    %c1_34 = arith.constant 1 : index
    %c0_35 = arith.constant 0 : index
    %c0_36 = arith.constant 0 : index
    %54 = vector.load %arg8[%c0_33, %c1_34, %c0_35, %c0_36] : memref<1x4x8x8xbf16, #tpu.memory_space<vmem>>, vector<1x1x8x8xbf16>
    %55 = vector.shape_cast %54 : vector<1x1x8x8xbf16> to vector<8x8xbf16>
    %56 = vector.shape_cast %53 : vector<8x8xbf16> to vector<1x1x8x8xbf16>
    tpu.vector_store %arg8[%c0_33, %c1_34, %c0_35, %c0_36], %56 {strides = array<i32>} : memref<1x4x8x8xbf16, #tpu.memory_space<vmem>>, vector<1x1x8x8xbf16>,
    %57 = vector.extract_strided_slice %36 {offsets = [0, 72], sizes = [8, 8], strides = [1, 1]} : vector<8x96xbf16> to vector<8x8xbf16>
    %c0_37 = arith.constant 0 : index
    %c1_38 = arith.constant 1 : index
    %c0_39 = arith.constant 0 : index
    %c0_40 = arith.constant 0 : index
    %58 = vector.load %arg9[%c0_37, %c1_38, %c0_39, %c0_40] : memref<1x4x8x8xbf16, #tpu.memory_space<vmem>>, vector<1x1x8x8xbf16>
    %59 = vector.shape_cast %58 : vector<1x1x8x8xbf16> to vector<8x8xbf16>
    %60 = vector.shape_cast %57 : vector<8x8xbf16> to vector<1x1x8x8xbf16>
    tpu.vector_store %arg9[%c0_37, %c1_38, %c0_39, %c0_40], %60 {strides = array<i32>} : memref<1x4x8x8xbf16, #tpu.memory_space<vmem>>, vector<1x1x8x8xbf16>,
    %61 = vector.extract_strided_slice %36 {offsets = [0, 16], sizes = [8, 8], strides = [1, 1]} : vector<8x96xbf16> to vector<8x8xbf16>
    %c0_41 = arith.constant 0 : index
    %c2 = arith.constant 2 : index
    %c0_42 = arith.constant 0 : index
    %c0_43 = arith.constant 0 : index
    %62 = vector.load %arg7[%c0_41, %c2, %c0_42, %c0_43] : memref<1x4x8x8xbf16, #tpu.memory_space<vmem>>, vector<1x1x8x8xbf16>
    %63 = vector.shape_cast %62 : vector<1x1x8x8xbf16> to vector<8x8xbf16>
    %64 = vector.shape_cast %61 : vector<8x8xbf16> to vector<1x1x8x8xbf16>
    tpu.vector_store %arg7[%c0_41, %c2, %c0_42, %c0_43], %64 {strides = array<i32>} : memref<1x4x8x8xbf16, #tpu.memory_space<vmem>>, vector<1x1x8x8xbf16>,
    %65 = vector.extract_strided_slice %36 {offsets = [0, 48], sizes = [8, 8], strides = [1, 1]} : vector<8x96xbf16> to vector<8x8xbf16>
    %c0_44 = arith.constant 0 : index
    %c2_45 = arith.constant 2 : index
    %c0_46 = arith.constant 0 : index
    %c0_47 = arith.constant 0 : index
    %66 = vector.load %arg8[%c0_44, %c2_45, %c0_46, %c0_47] : memref<1x4x8x8xbf16, #tpu.memory_space<vmem>>, vector<1x1x8x8xbf16>
    %67 = vector.shape_cast %66 : vector<1x1x8x8xbf16> to vector<8x8xbf16>
    %68 = vector.shape_cast %65 : vector<8x8xbf16> to vector<1x1x8x8xbf16>
    tpu.vector_store %arg8[%c0_44, %c2_45, %c0_46, %c0_47], %68 {strides = array<i32>} : memref<1x4x8x8xbf16, #tpu.memory_space<vmem>>, vector<1x1x8x8xbf16>,
    %69 = vector.extract_strided_slice %36 {offsets = [0, 80], sizes = [8, 8], strides = [1, 1]} : vector<8x96xbf16> to vector<8x8xbf16>
    %c0_48 = arith.constant 0 : index
    %c2_49 = arith.constant 2 : index
    %c0_50 = arith.constant 0 : index
    %c0_51 = arith.constant 0 : index
    %70 = vector.load %arg9[%c0_48, %c2_49, %c0_50, %c0_51] : memref<1x4x8x8xbf16, #tpu.memory_space<vmem>>, vector<1x1x8x8xbf16>
    %71 = vector.shape_cast %70 : vector<1x1x8x8xbf16> to vector<8x8xbf16>
    %72 = vector.shape_cast %69 : vector<8x8xbf16> to vector<1x1x8x8xbf16>
    tpu.vector_store %arg9[%c0_48, %c2_49, %c0_50, %c0_51], %72 {strides = array<i32>} : memref<1x4x8x8xbf16, #tpu.memory_space<vmem>>, vector<1x1x8x8xbf16>,
    %73 = vector.extract_strided_slice %36 {offsets = [0, 24], sizes = [8, 8], strides = [1, 1]} : vector<8x96xbf16> to vector<8x8xbf16>
    %c0_52 = arith.constant 0 : index
    %c3 = arith.constant 3 : index
    %c0_53 = arith.constant 0 : index
    %c0_54 = arith.constant 0 : index
    %74 = vector.load %arg7[%c0_52, %c3, %c0_53, %c0_54] : memref<1x4x8x8xbf16, #tpu.memory_space<vmem>>, vector<1x1x8x8xbf16>
    %75 = vector.shape_cast %74 : vector<1x1x8x8xbf16> to vector<8x8xbf16>
    %76 = vector.shape_cast %73 : vector<8x8xbf16> to vector<1x1x8x8xbf16>
    tpu.vector_store %arg7[%c0_52, %c3, %c0_53, %c0_54], %76 {strides = array<i32>} : memref<1x4x8x8xbf16, #tpu.memory_space<vmem>>, vector<1x1x8x8xbf16>,
    %77 = vector.extract_strided_slice %36 {offsets = [0, 56], sizes = [8, 8], strides = [1, 1]} : vector<8x96xbf16> to vector<8x8xbf16>
    %c0_55 = arith.constant 0 : index
    %c3_56 = arith.constant 3 : index
    %c0_57 = arith.constant 0 : index
    %c0_58 = arith.constant 0 : index
    %78 = vector.load %arg8[%c0_55, %c3_56, %c0_57, %c0_58] : memref<1x4x8x8xbf16, #tpu.memory_space<vmem>>, vector<1x1x8x8xbf16>
    %79 = vector.shape_cast %78 : vector<1x1x8x8xbf16> to vector<8x8xbf16>
    %80 = vector.shape_cast %77 : vector<8x8xbf16> to vector<1x1x8x8xbf16>
    tpu.vector_store %arg8[%c0_55, %c3_56, %c0_57, %c0_58], %80 {strides = array<i32>} : memref<1x4x8x8xbf16, #tpu.memory_space<vmem>>, vector<1x1x8x8xbf16>,
    %81 = vector.extract_strided_slice %36 {offsets = [0, 88], sizes = [8, 8], strides = [1, 1]} : vector<8x96xbf16> to vector<8x8xbf16>
    %c0_59 = arith.constant 0 : index
    %c3_60 = arith.constant 3 : index
    %c0_61 = arith.constant 0 : index
    %c0_62 = arith.constant 0 : index
    %82 = vector.load %arg9[%c0_59, %c3_60, %c0_61, %c0_62] : memref<1x4x8x8xbf16, #tpu.memory_space<vmem>>, vector<1x1x8x8xbf16>
    %83 = vector.shape_cast %82 : vector<1x1x8x8xbf16> to vector<8x8xbf16>
    %84 = vector.shape_cast %81 : vector<8x8xbf16> to vector<1x1x8x8xbf16>
    tpu.vector_store %arg9[%c0_59, %c3_60, %c0_61, %c0_62], %84 {strides = array<i32>} : memref<1x4x8x8xbf16, #tpu.memory_space<vmem>>, vector<1x1x8x8xbf16>,
    return
  }
  func.func @transform_0(%arg0: i32, %arg1: i32) -> (i32, i32, i32) {
    %c0_i32 = arith.constant 0 : i32
    %c0_i32_0 = arith.constant 0 : i32
    return %arg0, %arg1, %c0_i32 : i32, i32, i32
  }
  func.func @transform_1(%arg0: i32, %arg1: i32) -> (i32, i32, i32) {
    %c0_i32 = arith.constant 0 : i32
    %c0_i32_0 = arith.constant 0 : i32
    %c0_i32_1 = arith.constant 0 : i32
    return %arg0, %c0_i32, %c0_i32_0 : i32, i32, i32
  }
  func.func @transform_2(%arg0: i32, %arg1: i32) -> (i32, i32, i32) {
    %c0_i32 = arith.constant 0 : i32
    %c0_i32_0 = arith.constant 0 : i32
    %c0_i32_1 = arith.constant 0 : i32
    return %arg0, %c0_i32, %c0_i32_0 : i32, i32, i32
  }
  func.func @transform_3(%arg0: i32, %arg1: i32) -> (i32, i32) {
    %c0_i32 = arith.constant 0 : i32
    %c0_i32_0 = arith.constant 0 : i32
    %c0_i32_1 = arith.constant 0 : i32
    return %c0_i32, %c0_i32_0 : i32, i32
  }
  func.func @transform_4(%arg0: i32, %arg1: i32) -> (i32, i32) {
    %c0_i32 = arith.constant 0 : i32
    %c0_i32_0 = arith.constant 0 : i32
    %c0_i32_1 = arith.constant 0 : i32
    return %c0_i32, %c0_i32_0 : i32, i32
  }
  func.func @transform_5(%arg0: i32, %arg1: i32) -> (i32, i32, i32, i32) {
    %c0_i32 = arith.constant 0 : i32
    %c0_i32_0 = arith.constant 0 : i32
    %c0_i32_1 = arith.constant 0 : i32
    return %arg0, %c0_i32, %arg1, %c0_i32_0 : i32, i32, i32, i32
  }
  func.func @transform_6(%arg0: i32, %arg1: i32) -> (i32, i32, i32, i32) {
    %c0_i32 = arith.constant 0 : i32
    %c0_i32_0 = arith.constant 0 : i32
    %c0_i32_1 = arith.constant 0 : i32
    return %arg0, %c0_i32, %arg1, %c0_i32_0 : i32, i32, i32, i32
  }
  func.func @transform_7(%arg0: i32, %arg1: i32) -> (i32, i32, i32, i32) {
    %c0_i32 = arith.constant 0 : i32
    %c0_i32_0 = arith.constant 0 : i32
    %c0_i32_1 = arith.constant 0 : i32
    return %arg0, %c0_i32, %arg1, %c0_i32_0 : i32, i32, i32, i32
  }
}

module attributes {stable_mosaic.version = 11 : i64} {
  func.func @kernel(%arg0: i32, %arg1: i32, %arg2: memref<1x8x32xf32, #tpu.memory_space<vmem>>, %arg3: memref<1x1x32xf32, #tpu.memory_space<vmem>>, %arg4: memref<1x1x32xf32, #tpu.memory_space<vmem>>, %arg5: memref<32x96xbf16, #tpu.memory_space<vmem>>, %arg6: memref<1x96xf32, #tpu.memory_space<vmem>>, %arg7: memref<1x4x8x8xbf16, #tpu.memory_space<vmem>>, %arg8: memref<1x4x8x8xbf16, #tpu.memory_space<vmem>>, %arg9: memref<1x4x8x8xbf16, #tpu.memory_space<vmem>>) attributes {dimension_semantics = [#tpu.dimension_semantics<parallel>, #tpu.dimension_semantics<parallel>], iteration_bounds = array<i64: 2, 1>, scalar_prefetch = 0 : i64, scratch_operands = 0 : i64, tpu.core_type = #tpu.core_type<tc>, window_params = [{transform_indices = @transform_0, window_bounds = array<i64: 1, 8, 32>}, {transform_indices = @transform_1, window_bounds = array<i64: 1, 1, 32>}, {transform_indices = @transform_2, window_bounds = array<i64: 1, 1, 32>}, {pipeline_mode = #tpu.pipeline_mode<synchronous>, transform_indices = @transform_3, window_bounds = array<i64: 32, 96>}, {pipeline_mode = #tpu.pipeline_mode<synchronous>, transform_indices = @transform_4, window_bounds = array<i64: 1, 96>}, {transform_indices = @transform_5, window_bounds = array<i64: 1, 4, 8, 8>}, {transform_indices = @transform_6, window_bounds = array<i64: 1, 4, 8, 8>}, {transform_indices = @transform_7, window_bounds = array<i64: 1, 4, 8, 8>}]} {
    %c0 = arith.constant 0 : index
    %c0_0 = arith.constant 0 : index
    %c0_1 = arith.constant 0 : index
    %0 = vector.load %arg2[%c0, %c0_0, %c0_1] : memref<1x8x32xf32, #tpu.memory_space<vmem>>, vector<1x8x32xf32>
    %1 = vector.shape_cast %0 : vector<1x8x32xf32> to vector<8x32xf32>
    %c0_2 = arith.constant 0 : index
    %c0_3 = arith.constant 0 : index
    %c0_4 = arith.constant 0 : index
    %2 = vector.load %arg3[%c0_2, %c0_3, %c0_4] : memref<1x1x32xf32, #tpu.memory_space<vmem>>, vector<1x1x32xf32>
    %3 = vector.shape_cast %2 : vector<1x1x32xf32> to vector<1x32xf32>
    %c0_5 = arith.constant 0 : index
    %c0_6 = arith.constant 0 : index
    %c0_7 = arith.constant 0 : index
    %4 = vector.load %arg4[%c0_5, %c0_6, %c0_7] : memref<1x1x32xf32, #tpu.memory_space<vmem>>, vector<1x1x32xf32>
    %5 = vector.shape_cast %4 : vector<1x1x32xf32> to vector<1x32xf32>
    %cst = arith.constant dense<0.000000e+00> : vector<8xf32>
    %6 = vector.multi_reduction <add>, %1, %cst [1] : vector<8x32xf32> to vector<8xf32>
    %7 = vector.shape_cast %6 : vector<8xf32> to vector<8x1xf32>
    %cst_8 = arith.constant 3.200000e+01 : f32
    %8 = vector.broadcast %cst_8 : f32 to vector<8x1xf32>
    %9 = arith.divf %7, %8 : vector<8x1xf32>
    %10 = vector.broadcast %9 : vector<8x1xf32> to vector<8x32xf32>
    %11 = arith.subf %1, %10 : vector<8x32xf32>
    %12 = arith.mulf %11, %11 : vector<8x32xf32>
    %cst_9 = arith.constant dense<0.000000e+00> : vector<8xf32>
    %13 = vector.multi_reduction <add>, %12, %cst_9 [1] : vector<8x32xf32> to vector<8xf32>
    %14 = vector.shape_cast %13 : vector<8xf32> to vector<8x1xf32>
    %cst_10 = arith.constant 3.200000e+01 : f32
    %15 = vector.broadcast %cst_10 : f32 to vector<8x1xf32>
    %16 = arith.divf %14, %15 : vector<8x1xf32>
    %17 = vector.broadcast %9 : vector<8x1xf32> to vector<8x32xf32>
    %18 = arith.subf %1, %17 : vector<8x32xf32>
    %cst_11 = arith.constant 9.99999997E-7 : f32
    %19 = vector.broadcast %cst_11 : f32 to vector<8x1xf32>
    %20 = arith.addf %16, %19 : vector<8x1xf32>
    %21 = math.rsqrt %20 : vector<8x1xf32>
    %22 = vector.broadcast %21 : vector<8x1xf32> to vector<8x32xf32>
    %23 = arith.mulf %18, %22 : vector<8x32xf32>
    %cst_12 = arith.constant 1.000000e+00 : f32
    %24 = vector.broadcast %cst_12 : f32 to vector<1x32xf32>
    %25 = arith.addf %24, %5 : vector<1x32xf32>
    %26 = vector.broadcast %25 : vector<1x32xf32> to vector<8x32xf32>
    %27 = arith.mulf %23, %26 : vector<8x32xf32>
    %28 = vector.broadcast %3 : vector<1x32xf32> to vector<8x32xf32>
    %29 = arith.addf %27, %28 : vector<8x32xf32>
    %30 = arith.truncf %29 : vector<8x32xf32> to vector<8x32xbf16>
    %c0_13 = arith.constant 0 : index
    %c0_14 = arith.constant 0 : index
    %31 = vector.load %arg5[%c0_13, %c0_14] : memref<32x96xbf16, #tpu.memory_space<vmem>>, vector<32x96xbf16>
    %cst_15 = arith.constant dense<0.000000e+00> : vector<8x96xf32>
    %32 = tpu.matmul %30, %31, %cst_15 {dimension_numbers = #tpu.dot_dimension_numbers<[1], [0], [0], [1], [0, 0, 1, 1], [], []>} : vector<8x32xbf16>, vector<32x96xbf16>, vector<8x96xf32> -> vector<8x96xf32>
    %c0_16 = arith.constant 0 : index
    %c0_17 = arith.constant 0 : index
    %33 = vector.load %arg6[%c0_16, %c0_17] : memref<1x96xf32, #tpu.memory_space<vmem>>, vector<1x96xf32>
    %34 = vector.broadcast %33 : vector<1x96xf32> to vector<8x96xf32>
    %35 = arith.addf %32, %34 : vector<8x96xf32>
    %36 = arith.truncf %35 : vector<8x96xf32> to vector<8x96xbf16>
    %37 = vector.extract_strided_slice %36 {offsets = [0, 0], sizes = [8, 8], strides = [1, 1]} : vector<8x96xbf16> to vector<8x8xbf16>
    %c0_18 = arith.constant 0 : index
    %c0_19 = arith.constant 0 : index
    %c0_20 = arith.constant 0 : index
    %c0_21 = arith.constant 0 : index
    %38 = vector.load %arg7[%c0_18, %c0_19, %c0_20, %c0_21] : memref<1x4x8x8xbf16, #tpu.memory_space<vmem>>, vector<1x1x8x8xbf16>
    %39 = vector.shape_cast %38 : vector<1x1x8x8xbf16> to vector<8x8xbf16>
    %40 = vector.shape_cast %37 : vector<8x8xbf16> to vector<1x1x8x8xbf16>
    tpu.vector_store %arg7[%c0_18, %c0_19, %c0_20, %c0_21], %40 {strides = array<i32>} : memref<1x4x8x8xbf16, #tpu.memory_space<vmem>>, vector<1x1x8x8xbf16>,
    %41 = vector.extract_strided_slice %36 {offsets = [0, 32], sizes = [8, 8], strides = [1, 1]} : vector<8x96xbf16> to vector<8x8xbf16>
    %c0_22 = arith.constant 0 : index
    %c0_23 = arith.constant 0 : index
    %c0_24 = arith.constant 0 : index
    %c0_25 = arith.constant 0 : index
    %42 = vector.load %arg8[%c0_22, %c0_23, %c0_24, %c0_25] : memref<1x4x8x8xbf16, #tpu.memory_space<vmem>>, vector<1x1x8x8xbf16>
    %43 = vector.shape_cast %42 : vector<1x1x8x8xbf16> to vector<8x8xbf16>
    %44 = vector.shape_cast %41 : vector<8x8xbf16> to vector<1x1x8x8xbf16>
    tpu.vector_store %arg8[%c0_22, %c0_23, %c0_24, %c0_25], %44 {strides = array<i32>} : memref<1x4x8x8xbf16, #tpu.memory_space<vmem>>, vector<1x1x8x8xbf16>,
    %45 = vector.extract_strided_slice %36 {offsets = [0, 64], sizes = [8, 8], strides = [1, 1]} : vector<8x96xbf16> to vector<8x8xbf16>
    %c0_26 = arith.constant 0 : index
    %c0_27 = arith.constant 0 : index
    %c0_28 = arith.constant 0 : index
    %c0_29 = arith.constant 0 : index
    %46 = vector.load %arg9[%c0_26, %c0_27, %c0_28, %c0_29] : memref<1x4x8x8xbf16, #tpu.memory_space<vmem>>, vector<1x1x8x8xbf16>
    %47 = vector.shape_cast %46 : vector<1x1x8x8xbf16> to vector<8x8xbf16>
    %48 = vector.shape_cast %45 : vector<8x8xbf16> to vector<1x1x8x8xbf16>
    tpu.vector_store %arg9[%c0_26, %c0_27, %c0_28, %c0_29], %48 {strides = array<i32>} : memref<1x4x8x8xbf16, #tpu.memory_space<vmem>>, vector<1x1x8x8xbf16>,
    %49 = vector.extract_strided_slice %36 {offsets = [0, 8], sizes = [8, 8], strides = [1, 1]} : vector<8x96xbf16> to vector<8x8xbf16>
    %c0_30 = arith.constant 0 : index
    %c1 = arith.constant 1 : index
    %c0_31 = arith.constant 0 : index
    %c0_32 = arith.constant 0 : index
    %50 = vector.load %arg7[%c0_30, %c1, %c0_31, %c0_32] : memref<1x4x8x8xbf16, #tpu.memory_space<vmem>>, vector<1x1x8x8xbf16>
    %51 = vector.shape_cast %50 : vector<1x1x8x8xbf16> to vector<8x8xbf16>
    %52 = vector.shape_cast %49 : vector<8x8xbf16> to vector<1x1x8x8xbf16>
    tpu.vector_store %arg7[%c0_30, %c1, %c0_31, %c0_32], %52 {strides = array<i32>} : memref<1x4x8x8xbf16, #tpu.memory_space<vmem>>, vector<1x1x8x8xbf16>,
    %53 = vector.extract_strided_slice %36 {offsets = [0, 40], sizes = [8, 8], strides = [1, 1]} : vector<8x96xbf16> to vector<8x8xbf16>
    %c0_33 = arith.constant 0 : index
    %c1_34 = arith.constant 1 : index
    %c0_35 = arith.constant 0 : index
    %c0_36 = arith.constant 0 : index
    %54 = vector.load %arg8[%c0_33, %c1_34, %c0_35, %c0_36] : memref<1x4x8x8xbf16, #tpu.memory_space<vmem>>, vector<1x1x8x8xbf16>
    %55 = vector.shape_cast %54 : vector<1x1x8x8xbf16> to vector<8x8xbf16>
    %56 = vector.shape_cast %53 : vector<8x8xbf16> to vector<1x1x8x8xbf16>
    tpu.vector_store %arg8[%c0_33, %c1_34, %c0_35, %c0_36], %56 {strides = array<i32>} : memref<1x4x8x8xbf16, #tpu.memory_space<vmem>>, vector<1x1x8x8xbf16>,
    %57 = vector.extract_strided_slice %36 {offsets = [0, 72], sizes = [8, 8], strides = [1, 1]} : vector<8x96xbf16> to vector<8x8xbf16>
    %c0_37 = arith.constant 0 : index
    %c1_38 = arith.constant 1 : index
    %c0_39 = arith.constant 0 : index
    %c0_40 = arith.constant 0 : index
    %58 = vector.load %arg9[%c0_37, %c1_38, %c0_39, %c0_40] : memref<1x4x8x8xbf16, #tpu.memory_space<vmem>>, vector<1x1x8x8xbf16>
    %59 = vector.shape_cast %58 : vector<1x1x8x8xbf16> to vector<8x8xbf16>
    %60 = vector.shape_cast %57 : vector<8x8xbf16> to vector<1x1x8x8xbf16>
    tpu.vector_store %arg9[%c0_37, %c1_38, %c0_39, %c0_40], %60 {strides = array<i32>} : memref<1x4x8x8xbf16, #tpu.memory_space<vmem>>, vector<1x1x8x8xbf16>,
    %61 = vector.extract_strided_slice %36 {offsets = [0, 16], sizes = [8, 8], strides = [1, 1]} : vector<8x96xbf16> to vector<8x8xbf16>
    %c0_41 = arith.constant 0 : index
    %c2 = arith.constant 2 : index
    %c0_42 = arith.constant 0 : index
    %c0_43 = arith.constant 0 : index
    %62 = vector.load %arg7[%c0_41, %c2, %c0_42, %c0_43] : memref<1x4x8x8xbf16, #tpu.memory_space<vmem>>, vector<1x1x8x8xbf16>
    %63 = vector.shape_cast %62 : vector<1x1x8x8xbf16> to vector<8x8xbf16>
    %64 = vector.shape_cast %61 : vector<8x8xbf16> to vector<1x1x8x8xbf16>
    tpu.vector_store %arg7[%c0_41, %c2, %c0_42, %c0_43], %64 {strides = array<i32>} : memref<1x4x8x8xbf16, #tpu.memory_space<vmem>>, vector<1x1x8x8xbf16>,
    %65 = vector.extract_strided_slice %36 {offsets = [0, 48], sizes = [8, 8], strides = [1, 1]} : vector<8x96xbf16> to vector<8x8xbf16>
    %c0_44 = arith.constant 0 : index
    %c2_45 = arith.constant 2 : index
    %c0_46 = arith.constant 0 : index
    %c0_47 = arith.constant 0 : index
    %66 = vector.load %arg8[%c0_44, %c2_45, %c0_46, %c0_47] : memref<1x4x8x8xbf16, #tpu.memory_space<vmem>>, vector<1x1x8x8xbf16>
    %67 = vector.shape_cast %66 : vector<1x1x8x8xbf16> to vector<8x8xbf16>
    %68 = vector.shape_cast %65 : vector<8x8xbf16> to vector<1x1x8x8xbf16>
    tpu.vector_store %arg8[%c0_44, %c2_45, %c0_46, %c0_47], %68 {strides = array<i32>} : memref<1x4x8x8xbf16, #tpu.memory_space<vmem>>, vector<1x1x8x8xbf16>,
    %69 = vector.extract_strided_slice %36 {offsets = [0, 80], sizes = [8, 8], strides = [1, 1]} : vector<8x96xbf16> to vector<8x8xbf16>
    %c0_48 = arith.constant 0 : index
    %c2_49 = arith.constant 2 : index
    %c0_50 = arith.constant 0 : index
    %c0_51 = arith.constant 0 : index
    %70 = vector.load %arg9[%c0_48, %c2_49, %c0_50, %c0_51] : memref<1x4x8x8xbf16, #tpu.memory_space<vmem>>, vector<1x1x8x8xbf16>
    %71 = vector.shape_cast %70 : vector<1x1x8x8xbf16> to vector<8x8xbf16>
    %72 = vector.shape_cast %69 : vector<8x8xbf16> to vector<1x1x8x8xbf16>
    tpu.vector_store %arg9[%c0_48, %c2_49, %c0_50, %c0_51], %72 {strides = array<i32>} : memref<1x4x8x8xbf16, #tpu.memory_space<vmem>>, vector<1x1x8x8xbf16>,
    %73 = vector.extract_strided_slice %36 {offsets = [0, 24], sizes = [8, 8], strides = [1, 1]} : vector<8x96xbf16> to vector<8x8xbf16>
    %c0_52 = arith.constant 0 : index
    %c3 = arith.constant 3 : index
    %c0_53 = arith.constant 0 : index
    %c0_54 = arith.constant 0 : index
    %74 = vector.load %arg7[%c0_52, %c3, %c0_53, %c0_54] : memref<1x4x8x8xbf16, #tpu.memory_space<vmem>>, vector<1x1x8x8xbf16>
    %75 = vector.shape_cast %74 : vector<1x1x8x8xbf16> to vector<8x8xbf16>
    %76 = vector.shape_cast %73 : vector<8x8xbf16> to vector<1x1x8x8xbf16>
    tpu.vector_store %arg7[%c0_52, %c3, %c0_53, %c0_54], %76 {strides = array<i32>} : memref<1x4x8x8xbf16, #tpu.memory_space<vmem>>, vector<1x1x8x8xbf16>,
    %77 = vector.extract_strided_slice %36 {offsets = [0, 56], sizes = [8, 8], strides = [1, 1]} : vector<8x96xbf16> to vector<8x8xbf16>
    %c0_55 = arith.constant 0 : index
    %c3_56 = arith.constant 3 : index
    %c0_57 = arith.constant 0 : index
    %c0_58 = arith.constant 0 : index
    %78 = vector.load %arg8[%c0_55, %c3_56, %c0_57, %c0_58] : memref<1x4x8x8xbf16, #tpu.memory_space<vmem>>, vector<1x1x8x8xbf16>
    %79 = vector.shape_cast %78 : vector<1x1x8x8xbf16> to vector<8x8xbf16>
    %80 = vector.shape_cast %77 : vector<8x8xbf16> to vector<1x1x8x8xbf16>
    tpu.vector_store %arg8[%c0_55, %c3_56, %c0_57, %c0_58], %80 {strides = array<i32>} : memref<1x4x8x8xbf16, #tpu.memory_space<vmem>>, vector<1x1x8x8xbf16>,
    %81 = vector.extract_strided_slice %36 {offsets = [0, 88], sizes = [8, 8], strides = [1, 1]} : vector<8x96xbf16> to vector<8x8xbf16>
    %c0_59 = arith.constant 0 : index
    %c3_60 = arith.constant 3 : index
    %c0_61 = arith.constant 0 : index
    %c0_62 = arith.constant 0 : index
    %82 = vector.load %arg9[%c0_59, %c3_60, %c0_61, %c0_62] : memref<1x4x8x8xbf16, #tpu.memory_space<vmem>>, vector<1x1x8x8xbf16>
    %83 = vector.shape_cast %82 : vector<1x1x8x8xbf16> to vector<8x8xbf16>
    %84 = vector.shape_cast %81 : vector<8x8xbf16> to vector<1x1x8x8xbf16>
    tpu.vector_store %arg9[%c0_59, %c3_60, %c0_61, %c0_62], %84 {strides = array<i32>} : memref<1x4x8x8xbf16, #tpu.memory_space<vmem>>, vector<1x1x8x8xbf16>,
    return
  }
  func.func @transform_0(%arg0: i32, %arg1: i32) -> (i32, i32, i32) {
    %c0_i32 = arith.constant 0 : i32
    %c0_i32_0 = arith.constant 0 : i32
    return %arg0, %arg1, %c0_i32 : i32, i32, i32
  }
  func.func @transform_1(%arg0: i32, %arg1: i32) -> (i32, i32, i32) {
    %c0_i32 = arith.constant 0 : i32
    %c0_i32_0 = arith.constant 0 : i32
    %c0_i32_1 = arith.constant 0 : i32
    return %arg0, %c0_i32, %c0_i32_0 : i32, i32, i32
  }
  func.func @transform_2(%arg0: i32, %arg1: i32) -> (i32, i32, i32) {
    %c0_i32 = arith.constant 0 : i32
    %c0_i32_0 = arith.constant 0 : i32
    %c0_i32_1 = arith.constant 0 : i32
    return %arg0, %c0_i32, %c0_i32_0 : i32, i32, i32
  }
  func.func @transform_3(%arg0: i32, %arg1: i32) -> (i32, i32) {
    %c0_i32 = arith.constant 0 : i32
    %c0_i32_0 = arith.constant 0 : i32
    %c0_i32_1 = arith.constant 0 : i32
    return %c0_i32, %c0_i32_0 : i32, i32
  }
  func.func @transform_4(%arg0: i32, %arg1: i32) -> (i32, i32) {
    %c0_i32 = arith.constant 0 : i32
    %c0_i32_0 = arith.constant 0 : i32
    %c0_i32_1 = arith.constant 0 : i32
    return %c0_i32, %c0_i32_0 : i32, i32
  }
  func.func @transform_5(%arg0: i32, %arg1: i32) -> (i32, i32, i32, i32) {
    %c0_i32 = arith.constant 0 : i32
    %c0_i32_0 = arith.constant 0 : i32
    %c0_i32_1 = arith.constant 0 : i32
    return %arg0, %c0_i32, %arg1, %c0_i32_0 : i32, i32, i32, i32
  }
  func.func @transform_6(%arg0: i32, %arg1: i32) -> (i32, i32, i32, i32) {
    %c0_i32 = arith.constant 0 : i32
    %c0_i32_0 = arith.constant 0 : i32
    %c0_i32_1 = arith.constant 0 : i32
    return %arg0, %c0_i32, %arg1, %c0_i32_0 : i32, i32, i32, i32
  }
  func.func @transform_7(%arg0: i32, %arg1: i32) -> (i32, i32, i32, i32) {
    %c0_i32 = arith.constant 0 : i32
    %c0_i32_0 = arith.constant 0 : i32
    %c0_i32_1 = arith.constant 0 : i32
    return %arg0, %c0_i32, %arg1, %c0_i32_0 : i32, i32, i32, i32
  }
}

</mosaic_0001>

<bundles_post_ra>
// kernel: tpu_custom_call.1
= control target key start
LH: loop header
LB: loop body
LE: loop exit
PB: predicated region body
PF: predicated region fallthrough
CT: control target
= control target key end

     0   :  { %s1574_s0 = inlined_call_operand.hbm [shape: f32[2,8,32], index: 0, kind: input, shape index: {}]   ;;  %s1575_s1 = inlined_call_operand.hbm [shape: f32[2,1,32], index: 1, kind: input, shape index: {}]   ;;  %s1576_s2 = inlined_call_operand.vmem [shape: f32[2,1,32], index: 2, kind: input, shape index: {}]   ;;  %s1577_s3 = inlined_call_operand.hbm [shape: bf16[32,96], index: 3, kind: input, shape index: {}]   ;;  %s1578_s4 = inlined_call_operand.vmem [shape: f32[1,96], index: 4, kind: input, shape index: {}]   ;;  %s1579_s5 = inlined_call_operand.hbm [shape: bf16[2,4,8,8], index: 5, kind: output, shape index: {0}]   ;;  %s1580_s6 = inlined_call_operand.hbm [shape: bf16[2,4,8,8], index: 6, kind: output, shape index: {1}]   ;;  %s1581_s7 = inlined_call_operand.hbm [shape: bf16[2,4,8,8], index: 7, kind: output, shape index: {2}]  }
   0x1   :  { %1588 = sst [smem:[#allocation22_spill]] %s1574_s0 }
   0x2   :  { %1589 = sst [smem:[#allocation23_spill]] %s1577_s3 }
   0x3   :  { %13 = vsyncpa [#allocation3], 0 }
   0x4   :  { %15 = vsyncpa [#allocation3 + $0x1], 0 }
   0x5   :  { %16 = vsyncpa [#allocation6], 0 }
   0x6   :  { %18 = vsyncpa [#allocation6 + $0x1], 0 }
   0x7   :  { %19 = vsyncpa [#allocation4], 0 }
   0x8   :  { %21 = vsyncpa [#allocation4 + $0x1], 0 }
   0x9   :  { %22 = vsyncpa [#allocation10], 0 }
   0xa   :  { %24 = vsyncpa [#allocation10 + $0x1], 0  ;;  %s1254_s24 = smov 0   ;;  %s1256_s25 = smov 0  }
   0xb   :  { %s1258_s26 = smov 0   ;;  %s1260_s27 = smov 0  }
   0xc   :  { %s1262_s28 = smov 0   ;;  %s1264_s29 = smov 0  }
   0xd LB: > { %1590 = sst [smem:[#allocation17_spill]] %s1178_s26  ;;  %s1285_s30 = sadd.s32 4294967295, %s1190_s29   ;;  %s1190_s29 = sphi %s1264_s29, %s30_s29   ;;  %s1186_s28 = sphi %s1262_s28, %s1615_s28   ;;  %s1182_s27 = sphi %s1260_s27, %s1614_s27   ;;  %s1178_s26 = sphi %s1258_s26, %s1610_s26   ;;  %s1174_s25 = sphi %s1256_s25, %s1613_s25   ;;  %s1170_s24 = sphi %s1254_s24, %s1612_s24  }
   0xe   : > { %1591 = sst [smem:[#allocation18_spill]] %s1190_s29  ;;  %s1582_s8 = sadd.s32 4294967294, %s1190_s29  }
   0xf   : > { %p64_p0 = scmp.ne.s32.totalorder %s1174_s25, %s1170_s24  ;;  %p65_p1 = scmp.eq.s32.totalorder %s1285_s30, 0 }
  0x10   : > { %p190_p3 = scmp.eq.s32.totalorder %s1582_s8, 1  ;;  %p803_p5 = scmp.ge.s32.totalorder %s1190_s29, 1 }
  0x11   : > { %p1296_p4 = por %p65_p1, %p64_p0  ;;  %p253_p7 = scmp.lt.s32.totalorder %s1190_s29, 3 }
  0x12   : > { %p1301_p6 = por %p190_p3, %p64_p0  ;;  %s1192_s12 = smov [#allocation7]  }
  0x13   : > { %p1306_p8 = pnand %p803_p5, %p253_p7  ;;  %s265_s13 = sshll.u32 %s1192_s12, 4  ;;  %s266_s13 = int_to_ptr.vmem [resolvable:$true] %s265_s13 }
  0x14   : > { %s1593_s10 = scalar_select %p1301_p6, 1, 0 }
  0x15   : > { %p870_p9 = pneg %p1306_p8  ;;  %p805_p10 = scmp.ge.s32.totalorder %s1190_s29, 2 }
  0x16   : > { %1594 = sst [smem:[#allocation19_spill]] %s1593_s10  ;;  %s42_s15 = sadd.s32 1, %s1186_s28 }
  0x17   : > { %p1315_p11 = pnand %p870_p9, %p65_p1  ;;  %s975_s16 = scalar_lea.vmem %s266_s13, 256 }
  0x18   : > { %p976_p13 = scmp.ne.s32.totalorder %s266_s13, %s975_s16  ;;  %p983_p5 = scmp.lt.s32.totalorder %s266_s13, %s266_s13 }
  0x19   : > { %p966_p12 = pneg %p1315_p11  ;;  %p984_p7 = scmp.lt.s32.totalorder %s975_s16, %s975_s16 }
  0x1b   : > { %p978_p0 = pnand %p976_p13, %p966_p12  ;;  %p985_p2 = por %p984_p7, %p983_p5 }
  0x1d   : > { %p979_p3 = pneg %p978_p0 }
  0x1f   : > { %p986_p6 = pnand %p985_p2, %p979_p3 }
  0x21   : > { %989 = shalt.err (!%p986_p6)
}
  0x22   : > { %s1193_s17 = smov 64   ;;  %s1194_s18 = smov 4  }
  0x23   : > { %s1597_s3 = sld [smem:[#allocation23_spill]]  ;;  %p44_p2 = scmp.ge.s32.totalorder %s42_s15, 2 }
  0x24   : > { %s51_s21 = sadd.s32 1, %s1178_s26  ;;  %p58_p6 = scmp.ne.s32.totalorder %s1178_s26, %s1174_s25 }
  0x25   : > { %p59_p9 = scmp.eq.s32.totalorder %s1190_s29, 0  ;;  %s1617_s15 = smov (%p44_p2, %s42_s15), 0 }
  0x26   : > { %1598 = sst [smem:[#allocation20_spill]] %s1617_s15  ;;  %p1600_p13 = scmp.eq.s32.totalorder %s1285_s30, 1 }
  0x27   : > { %p1333_p12 = por %p59_p9, %p58_p6  ;;  %s46_s12 = ssub.s32 %s1186_s28, %s1617_s15 }
  0x28   : > { %p1339_p0 = por %p1600_p13, %p58_p6  ;;  %p49_p3 = scmp.eq.s32.totalorder %s46_s12, 0 }
  0x29   : > { %873 = dma.hbm_to_vmem [thread:$0]  (!%p1315_p11), %s1597_s3, 256, %s266_s13, [#allocation6], %s1193_s17, %s1193_s17, %s1194_s18  }
  0x2a   : > { %p892_p11 = scmp.lt.s32.totalorder %s1190_s29, 2  ;;  %s282_s13 = sand.u32 1, %s1178_s26  }
  0x2b   : > { %s806_s14 = sshll.u32 %s282_s13, 3  ;;  %s807_s17 = sshll.u32 %s1186_s28, 7 }
  0x2c   : > { %s1348_s16 = scalar_select %p49_p3, %s1178_s26, %s51_s21  }
  0x2d   : > { %s1603_s0 = sld [smem:[#allocation22_spill]]  ;;  %s286_s8 = scalar_lea.vmem [#allocation2], %s806_s14 }
  0x2e   : > { %1602 = sst [smem:[#allocation21_spill]] %s1348_s16  ;;  %s294_s3 = sshll.u32 %s286_s8, 4  ;;  %s295_s3 = int_to_ptr.vmem [resolvable:$true] %s294_s3 }
  0x2f   : > { %p1356_p5 = pnand %p892_p11, %p1333_p12  ;;  %s301_s12 = sand.u32 1, %s1190_s29  }
  0x30   : > { %s283_s15 = scalar_lea.sflag [#allocation3], %s282_s13  ;;  %s1003_s21 = scalar_lea.vmem %s295_s3, 128 }
  0x31   : > { %p992_p7 = pneg %p1356_p5  ;;  %p1004_p2 = scmp.ne.s32.totalorder %s295_s3, %s1003_s21 }
  0x32   : > { %s1195_s14 = smov [#allocation2]  }
  0x33   : > { %s292_s20 = scalar_lea.hbm %s1603_s0, %s807_s17  ;;  %p1006_p6 = pnand %p1004_p2, %p992_p7 }
  0x34   : > { %s1008_s8 = sshll.u32 %s1195_s14, 4  ;;  %s1009_s8 = int_to_ptr.vmem [resolvable:$false] %s1008_s8 }
  0x35   : > { %p1007_p9 = pneg %p1006_p6  ;;  %s1010_s22 = scalar_lea.vmem %s1009_s8, 256 }
  0x36   : > { %p1011_p12 = scmp.lt.s32.totalorder %s295_s3, %s1009_s8  ;;  %p1012_p13 = scmp.lt.s32.totalorder %s1010_s22, %s1003_s21 }
  0x38   : > { %p1013_p11 = por %p1012_p13, %p1011_p12 }
  0x3a   : > { %p1014_p3 = pnand %p1013_p11, %p1007_p9 }
  0x3c   : > { %1017 = shalt.err (!%p1014_p3)
}
  0x3d   : > { %877 = dma.hbm_to_vmem [thread:$0]  (!%p1356_p5), %s292_s20, 128, %s295_s3, %s283_s15  }
  0x3e   : > { %s808_s17 = sshll.u32 %s1186_s28, 4  ;;  %s304_s18 = scalar_lea.vmem [#allocation5], %s282_s13 }
  0x3f   : > { %s311_s19 = sshll.u32 %s304_s18, 4  ;;  %s309_s26 = scalar_lea.hbm %s1575_s1, %s808_s17  ;;  %s312_s19 = int_to_ptr.vmem [resolvable:$true] %s311_s19 }
  0x40   : > { %s302_s14 = scalar_lea.sflag [#allocation6], %s301_s12  ;;  %s1031_s29 = scalar_lea.vmem %s312_s19, 16 }
  0x41   : > { %p1032_p2 = scmp.ne.s32.totalorder %s312_s19, %s1031_s29  ;;  %s1196_s21 = smov [#allocation5]  }
  0x42   : > { %s1036_s8 = sshll.u32 %s1196_s21, 4  ;;  %s1037_s8 = int_to_ptr.vmem [resolvable:$false] %s1036_s8 }
  0x43   : > { %p1034_p6 = pnand %p1032_p2, %p992_p7  ;;  %s1038_s22 = scalar_lea.vmem %s1037_s8, 32 }
  0x44   : > { %p1039_p12 = scmp.lt.s32.totalorder %s312_s19, %s1037_s8  ;;  %p1040_p13 = scmp.lt.s32.totalorder %s1038_s22, %s1031_s29 }
  0x45   : > { %p1035_p9 = pneg %p1034_p6 }
  0x46   : > { %p1041_p11 = por %p1040_p13, %p1039_p12 }
  0x48   : > { %p1042_p3 = pnand %p1041_p11, %p1035_p9 }
  0x4a   : > { %1045 = shalt.err (!%p1042_p3)
}
  0x4b   : > { %880 = dma.hbm_to_vmem [thread:$0]  (!%p1356_p5), %s309_s26, 16, %s312_s19, %s302_s14  }
  0x4c   : > { %326 = sbr.rel (%p1306_p8) target bundleno = 778 (0x30a), region = 40  ;;  %s1380_s0 = sand.u32 (!%p1306_p8), 1, %s1174_s25  }
  0x4d   : > { %s810_s3 = sshll.u32 (!%p1306_p8), %s1380_s0, 3  ;;  %s329_s15 = scalar_lea.sflag (!%p1306_p8), [#allocation3], %s1380_s0 }
  0x4e   : > { %s332_s13 = scalar_lea.vmem (!%p1306_p8), [#allocation2], %s810_s3 }
  0x51   : > { %1149 = dma.done.wait (%p1296_p4), %s329_s15, 128  }
  0x52   : > { %1151 = vsyncadd (%p1296_p4), %s329_s15, 4294967168  ;;  %s337_s26 = sand.u32 1, %s1285_s30   ;;  %s340_s10 = scalar_lea.vmem [#allocation5], %s1380_s0 }
  0x53   : > { %s338_s29 = scalar_lea.sflag [#allocation6], %s337_s26 }
  0x54   : > { %1153 = dma.done.wait (%p1296_p4), %s338_s29, 16  }
  0x55   : > { %1155 = vsyncadd (%p1296_p4), %s338_s29, 4294967280 }
  0x56   : > { %1157 = dma.done.wait (%p65_p1), [#allocation6], 256  }
  0x57   : > { %1159 = vsyncadd (%p65_p1), [#allocation6], 4294967040  ;;  %vm399_vm0 = vcmask 261120   ;;  %v396_v0 = vld [vmem:[%s332_s13] sm:$0xff]  ;;  %v1197_v8 = vmov 0.0   ;;  %vm1198_vm1 = vmmov 0   ;;  %v416_v13 = vlaneseq }
  0x58   : > { %v400_v1 = vsel %vm399_vm0, %v396_v0, 0.0  ;;  %v960_v7 = vld [vmem:[#allocation7 + $0x8] sm:$0xff]   ;;  %848 = vmatprep.subr.bf16.mxu0 %v1197_v8  ;;  %852 = vmatprep.mubr.msk.bf16.mxu0 %vm1198_vm1, %v1197_v8  ;;  %v961_v9 = vld [vmem:[#allocation7] sm:$0xff]   ;;  %p392_p1 = scmp.lt.s32.totalorder %s1182_s27, 1  ;;  %s1414_s18 = sshll.u32 %s1380_s0, 4  ;;  %vm497_vm2 = vcmask 60416  }
  0x59   : > { %401 = vadd.xlane.f32.xlu0 %v400_v1  ;;  %849 = vmatpush3.bf16.msra.mxu0 %v960_v7  ;;  %v417_v14 = vshrl.u32 %v416_v13, 7  ;;  %v815_v21 = vld [vmem:[%s340_s10] ss:$0 sm:$0xff]  ;;  %s1199_s19 = smov 80   ;;  %s1200_s14 = smov 96  }
  0x5a   : > { %850 = vmatprep.subr.bf16.mxu0 %v1197_v8  ;;  %s393_s9 = scalar_select %p392_p1, %s1182_s27, 1  ;;  %v816_v25 = vld [vmem:[%s1578_s4] ss:$0 sm:$0xff] }
  0x5b   : > { %v418_v17 = vsub.s32 0, %v417_v14  ;;  %s1417_s21 = scalar_lea.vmem [#allocation8], %s1414_s18  ;;  %s1201_s8 = smov 104  }
  0x5c   : > { %s394_s20 = scalar_lea.vmem %s1576_s2, %s393_s9  ;;  %s1202_s22 = smov 88  }
  0x5d   : > { %851 = vmatpush3.bf16.msra.mxu0 %v961_v9  ;;  %v398_v15 = vld [vmem:[%s394_s20] sm:$0x1]  ;;  %s1203_s3 = smov 72   ;;  %s1204_s15 = smov 64  }
  0x5e   : > { %v414_v16 = vadd.f32 1.0, %v398_v15  ;;  %s1205_s13 = smov 120   ;;  %s1206_s29 = smov 56  }
  0x5f   : > { %s1207_s10 = smov 112   ;;  %s1208_s9 = smov 48  }
  0x60   : > { %v419_v18 = vrot.slane %v414_v16, %v418_v17  ;;  %s1209_s11 = smov 40   ;;  %s384_s16 = scalar_lea.vmem [#allocation9], %s1414_s18 }
  0x61   : > { %s597_s20 = sshll.u32 %s384_s16, 4  ;;  %s1426_s12 = sshll.u32 %s1182_s27, 8  ;;  %s1431_s20 = int_to_ptr.vmem [resolvable:$true] %s597_s20 }
  0x62   : > { %s1442_s27 = scalar_lea.sflag [#allocation10], %s337_s26 }
  0xe2   : > { %v402_v2 = vpop.xlane.xlu0 %401 }
  0xe3   : > { %v404_v3 = vmul.f32 0.03125, %v402_v2 }
  0xe5   : > { %v405_v4 = vsub.f32 %v396_v0, %v404_v3 }
  0xe7   : > { %v406_v5 = vmul.f32 %v405_v4, %v405_v4 }
  0xe9   : > { %v407_v6 = vsel %vm399_vm0, %v406_v5, 0.0 }
  0xea   : > { %408 = vadd.xlane.f32.xlu0 %v407_v6 }
 0x173   : > { %v409_v10 = vpop.xlane.xlu0 %408 }
 0x174   : > { %v410_v11 = vmul.f32 0.03125, %v409_v10 }
 0x176   : > { %v411_v12 = vadd.f32 1e-06, %v410_v11 }
 0x178   : > { %962 = vrsqrt.f32 %v411_v12 }
 0x185   : > { %v963_v19 = vpop.eup %962 }
 0x186   : > { %v413_v20 = vmul.f32 %v963_v19, %v405_v4 }
 0x188   : > { %v421_v22 = vmul.f32 %v419_v18, %v413_v20 }
 0x18a   : > { %v428_v23 = vadd.f32 %v815_v21, %v421_v22 }
 0x18c   : > { %v429_v24 = vpack.c.bf16 %v428_v23, %v428_v23 }
 0x18e   : > { %853 = vmatmul.mubr.msk.bf16.vlgmr.msra.gmra.mxu0 %vm399_vm0, %v429_v24 }
 0x24e   : > { %v490_v26 = vpop.f32.mrf.mxu0 }
 0x24f   : > { %v491_v27 = vadd.f32 %v816_v25, %v490_v26 }
 0x250   : > { %v854_v28 = vpop.f32.mrf.mxu0 }
 0x251   : > { %v496_v29 = vpack.c.bf16 %v491_v27, %v491_v27 }
 0x252   : > { %v493_v30 = vpop.f32.mrf.mxu0 }
 0x253   : > { %530 = vrot.lane.b32.xlu0 %v496_v29, %s1199_s19  ;;  %502 = vrot.lane.b32.xlu1 %v496_v29, %s1200_s14  ;;  %498 = vst.msk [vmem:[%s1417_s21] sm:$0xf] %vm497_vm2, %v496_v29  ;;  %s1437_s14 = scalar_lea.hbm %s1580_s6, %s1426_s12 }
 0x254   : > { %v855_v31 = vpop.f32.mrf.mxu0 }
 0x257   : > { %540 = vrot.lane.b32.xlu0 %v496_v29, %s1201_s8  ;;  %515 = vrot.lane.b32.xlu1 %v496_v29, %s1202_s22  ;;  %s1046_s8 = scalar_lea.vmem %s1431_s20, 256  ;;  %s1210_s22 = smov [#allocation9]  }
 0x258   : > { %p1047_p4 = scmp.ne.s32.totalorder %s1431_s20, %s1046_s8 }
 0x25a   : > { %p1048_p8 = pnand %p1047_p4, %p1339_p0 }
 0x25b   : > { %545 = vrot.lane.b32.xlu1 %v496_v29, %s1203_s3  ;;  %s1050_s3 = sshll.u32 %s1210_s22, 4  ;;  %s1051_s3 = int_to_ptr.vmem [resolvable:$false] %s1050_s3 }
 0x25c   : > { %p1049_p5 = pneg %p1048_p8  ;;  %p1053_p7 = scmp.lt.s32.totalorder %s1431_s20, %s1051_s3 }
 0x25f   : > { %506 = vrot.lane.b32.xlu1 %v496_v29, %s1204_s15 }
 0x263   : > { %510 = vrot.lane.b32.xlu1 %v496_v29, %s1205_s13  ;;  %s1052_s13 = scalar_lea.vmem %s1051_s3, 512 }
 0x264   : > { %p1054_p2 = scmp.lt.s32.totalorder %s1052_s13, %s1046_s8 }
 0x266   : > { %p1055_p6 = por %p1054_p2, %p1053_p7 }
 0x267   : > { %520 = vrot.lane.b32.xlu1 %v496_v29, %s1206_s29 }
 0x268   : > { %p1056_p9 = pnand %p1055_p6, %p1049_p5 }
 0x26b   : > { %525 = vrot.lane.b32.xlu1 %v496_v29, %s1207_s10 }
 0x26f   : > { %535 = vrot.lane.b32.xlu1 %v496_v29, %s1208_s9 }
 0x273   : > { %550 = vrot.lane.b32.xlu1 %v496_v29, %s1209_s11 }
 0x2c5   : > { %v531_v32 = vpop.permute.xlu0 %530  ;;  %v503_v33 = vpop.permute.xlu1 %502 }
 0x2c6   : > { %825 = vst.msk [vmem:[%s384_s16 + $0x8] sm:$0xf] %vm497_vm2, %v531_v32  ;;  %505 = vst.msk [vmem:[%s384_s16] sm:$0xf] %vm497_vm2, %v503_v33 }
 0x2c9   : > { %v541_v34 = vpop.permute.xlu0 %540  ;;  %v516_v35 = vpop.permute.xlu1 %515 }
 0x2ca   : > { %827 = vst.msk [vmem:[%s1417_s21 + $0xc] sm:$0xf] %vm497_vm2, %v541_v34  ;;  %822 = vst.msk [vmem:[%s384_s16 + $0x4] sm:$0xf] %vm497_vm2, %v516_v35 }
 0x2cd   : > { %v546_v36 = vpop.permute.xlu1 %545 }
 0x2ce   : > { %828 = vst.msk [vmem:[%s384_s16 + $0xc] sm:$0xf] %vm497_vm2, %v546_v36 }
 0x2cf   : > { %1059 = shalt.err (!%p1056_p9)
}
 0x2d0   : > { %s1060_s30 = scalar_lea.hbm %s1437_s14, 256  ;;  %s1064_s10 = scalar_lea.hbm %s1580_s6, 512 }
 0x2d1   : > { %p1061_p12 = scmp.ne.s32.totalorder %s1437_s14, %s1060_s30  ;;  %p1065_p3 = scmp.lt.s32.totalorder %s1437_s14, %s1580_s6 }
 0x2d2   : > { %p1066_p1 = scmp.lt.s32.totalorder %s1064_s10, %s1060_s30 }
 0x2d3   : > { %p1062_p13 = pnand %p1061_p12, %p1339_p0 }
 0x2d4   : > { %p1067_p4 = por %p1066_p1, %p1065_p3 }
 0x2d5   : > { %p1063_p11 = pneg %p1062_p13 }
 0x2d7   : > { %p1068_p8 = pnand %p1067_p4, %p1063_p11 }
 0x2d9   : > { %1071 = shalt.err (!%p1068_p8)
}
 0x2da   : > { %s1211_s16 = smov 4   ;;  %v507_v37 = vpop.permute.xlu1 %506  ;;  %s1469_s17 = scalar_lea.vmem [#allocation11], %s1414_s18 }
 0x2db   : > { %865 = dma.vmem_to_hbm [thread:$0]  (%p1339_p0), %s1431_s20, 256, %s1437_s14, %s1442_s27, %s1204_s15, %s1204_s15, %s1211_s16  }
 0x2dc   : > { %509 = vst.msk [vmem:[%s1469_s17] sm:$0xf] %vm497_vm2, %v507_v37  ;;  %s580_s19 = sshll.u32 %s1417_s21, 4  ;;  %s1484_s18 = scalar_lea.hbm %s1579_s5, %s1426_s12  ;;  %s1478_s19 = int_to_ptr.vmem [resolvable:$true] %s580_s19 }
 0x2dd   : > { %s556_s20 = scalar_lea.sflag [#allocation4], %s1380_s0  ;;  %s1072_s14 = scalar_lea.vmem %s1478_s19, 256 }
 0x2de   : > { %v511_v38 = vpop.permute.xlu1 %510  ;;  %p1073_p5 = scmp.ne.s32.totalorder %s1478_s19, %s1072_s14  ;;  %s1212_s3 = smov [#allocation8]  }
 0x2df   : > { %821 = vst.msk [vmem:[%s1417_s21 + $0x4] sm:$0xf] %vm497_vm2, %v511_v38  ;;  %s1076_s13 = sshll.u32 %s1212_s3, 4  ;;  %s1077_s13 = int_to_ptr.vmem [resolvable:$false] %s1076_s13 }
 0x2e0   : > { %p1074_p7 = pnand %p1073_p5, %p1339_p0  ;;  %s1078_s30 = scalar_lea.vmem %s1077_s13, 512 }
 0x2e1   : > { %p1079_p6 = scmp.lt.s32.totalorder %s1478_s19, %s1077_s13  ;;  %p1080_p9 = scmp.lt.s32.totalorder %s1078_s30, %s1072_s14 }
 0x2e2   : > { %v521_v39 = vpop.permute.xlu1 %520  ;;  %p1075_p2 = pneg %p1074_p7 }
 0x2e3   : > { %823 = vst.msk [vmem:[%s1469_s17 + $0x4] sm:$0xf] %vm497_vm2, %v521_v39  ;;  %p1081_p12 = por %p1080_p9, %p1079_p6 }
 0x2e5   : > { %p1082_p13 = pnand %p1081_p12, %p1075_p2 }
 0x2e6   : > { %v526_v40 = vpop.permute.xlu1 %525 }
 0x2e7   : > { %824 = vst.msk [vmem:[%s1417_s21 + $0x8] sm:$0xf] %vm497_vm2, %v526_v40 }
 0x2e8   : > { %1085 = shalt.err (!%p1082_p13)
}
 0x2e9   : > { %s1086_s21 = scalar_lea.hbm %s1484_s18, 256  ;;  %s1090_s29 = scalar_lea.hbm %s1579_s5, 512 }
 0x2ea   : > { %p1087_p11 = scmp.ne.s32.totalorder %s1484_s18, %s1086_s21  ;;  %p1091_p4 = scmp.lt.s32.totalorder %s1484_s18, %s1579_s5 }
 0x2eb   : > { %p1092_p8 = scmp.lt.s32.totalorder %s1090_s29, %s1086_s21 }
 0x2ec   : > { %p1088_p3 = pnand %p1087_p11, %p1339_p0 }
 0x2ed   : > { %p1093_p5 = por %p1092_p8, %p1091_p4 }
 0x2ee   : > { %p1089_p1 = pneg %p1088_p3 }
 0x2f0   : > { %p1094_p7 = pnand %p1093_p5, %p1089_p1 }
 0x2f2   : > { %1097 = shalt.err (!%p1094_p7)
}
 0x2f3   : > { %864 = dma.vmem_to_hbm [thread:$0]  (%p1339_p0), %s1478_s19, 256, %s1484_s18, %s556_s20, %s1204_s15, %s1204_s15, %s1211_s16   ;;  %v536_v41 = vpop.permute.xlu1 %535 }
 0x2f4   : > { %s614_s11 = sshll.u32 %s1469_s17, 4  ;;  %826 = vst.msk [vmem:[%s1469_s17 + $0x8] sm:$0xf] %vm497_vm2, %v536_v41  ;;  %s1521_s14 = scalar_lea.hbm %s1581_s7, %s1426_s12  ;;  %s1515_s11 = int_to_ptr.vmem [resolvable:$true] %s614_s11 }
 0x2f5   : > { %s1098_s3 = scalar_lea.vmem %s1515_s11, 256  ;;  %s1213_s19 = smov [#allocation11]  }
 0x2f6   : > { %p1099_p2 = scmp.ne.s32.totalorder %s1515_s11, %s1098_s3  ;;  %s1102_s18 = sshll.u32 %s1213_s19, 4  ;;  %s1103_s18 = int_to_ptr.vmem [resolvable:$false] %s1102_s18 }
 0x2f7   : > { %v551_v42 = vpop.permute.xlu1 %550  ;;  %s1104_s20 = scalar_lea.vmem %s1103_s18, 512  ;;  %p1105_p12 = scmp.lt.s32.totalorder %s1515_s11, %s1103_s18 }
 0x2f8   : > { %829 = vst.msk [vmem:[%s1469_s17 + $0xc] sm:$0xf] %vm497_vm2, %v551_v42  ;;  %p1100_p6 = pnand %p1099_p2, %p1339_p0  ;;  %p1106_p13 = scmp.lt.s32.totalorder %s1104_s20, %s1098_s3 }
 0x2fa   : > { %p1101_p9 = pneg %p1100_p6  ;;  %p1107_p11 = por %p1106_p13, %p1105_p12 }
 0x2fc   : > { %p1108_p3 = pnand %p1107_p11, %p1101_p9 }
 0x2fe   : > { %1111 = shalt.err (!%p1108_p3)
}
 0x2ff   : > { %s1112_s12 = scalar_lea.hbm %s1521_s14, 256  ;;  %s1116_s30 = scalar_lea.hbm %s1581_s7, 512 }
 0x300   : > { %p1113_p1 = scmp.ne.s32.totalorder %s1521_s14, %s1112_s12  ;;  %p1117_p5 = scmp.lt.s32.totalorder %s1521_s14, %s1581_s7 }
 0x301   : > { %p1118_p7 = scmp.lt.s32.totalorder %s1116_s30, %s1112_s12 }
 0x302   : > { %p1114_p4 = pnand %p1113_p1, %p1339_p0 }
 0x303   : > { %p1119_p2 = por %p1118_p7, %p1117_p5 }
 0x304   : > { %p1115_p8 = pneg %p1114_p4 }
 0x306   : > { %p1120_p6 = pnand %p1119_p2, %p1115_p8 }
 0x308   : > { %1123 = shalt.err (!%p1120_p6)
}
 0x309   : > { %866 = dma.vmem_to_hbm [thread:$0]  (%p1339_p0), %s1515_s11, 256, %s1521_s14, %s1442_s27, %s1204_s15, %s1204_s15, %s1211_s16  }
 0x30a PF: > { %s1605_s26 = sld [smem:[#allocation19_spill]]  ;;  %s629_s10 = sand.u32 1, %s1170_s24  }
 0x30b   : > { %s1606_s29 = sld [smem:[#allocation18_spill]]  ;;  %s630_s9 = scalar_lea.sflag [#allocation4], %s629_s10 }
 0x310   : > { %p1607_p9 = scmp.ne.s32.totalorder %s1605_s26, 0 }
 0x312   : > { %p882_p12 = pnand %p805_p10, %p1607_p9 }
 0x314   : > { %p883_p13 = pneg %p882_p12 }
 0x316   : > { %1161 = dma.done.wait (%p883_p13), %s630_s9, 256  }
 0x317   : > { %1163 = vsyncadd (%p883_p13), %s630_s9, 4294967040  ;;  %s1608_s23 = sadd.s32 4294967294, %s1606_s29  }
 0x318   : > { %s638_s8 = sand.u32 1, %s1608_s23  }
 0x319   : > { %s639_s22 = scalar_lea.sflag [#allocation10], %s638_s8 }
 0x31a   : > { %1165 = dma.done.wait (%p883_p13), %s639_s22, 512  }
 0x31b   : > { %1167 = vsyncadd (%p883_p13), %s639_s22, 4294966784  ;;  %s30_s29 = sadd.s32 1, %s1606_s29   ;;  %s1609_s15 = sld [smem:[#allocation17_spill]] }
 0x31c   : > { %p27_p0 = scmp.ge.s32.totalorder %s30_s29, 4   ;;  %s1610_s26 = sld [smem:[#allocation21_spill]] }
 0x31d   : > { %s1611_s16 = sld [smem:[#allocation20_spill]]  ;;  %s1612_s24 = smov %s1174_s25 }
 0x31e   : > { %s1614_s27 = smov %s1186_s28 }
 0x31f   :  { %29 = sbr.rel (!%p27_p0) target bundleno = 13 (0xd), region = 146 }
 0x321   : > { %s1613_s25 = smov %s1609_s15 }
 0x323   : > { %s1615_s28 = smov %s1611_s16 }
 0x324   :  { %653 = vsyncpa [#allocation3], 1 }
 0x325   :  { %655 = vsyncpa [#allocation3 + $0x1], 1 }
 0x326   :  { %656 = vsyncpa [#allocation6], 1 }
 0x327   :  { %658 = vsyncpa [#allocation6 + $0x1], 1 }
 0x328   :  { %659 = vsyncpa [#allocation4], 1 }
 0x329   :  { %661 = vsyncpa [#allocation4 + $0x1], 1 }
 0x32a   :  { %662 = vsyncpa [#allocation10], 1 }
 0x32b   :  { %664 = vsyncpa [#allocation10 + $0x1], 1 }

// kernel: tpu_custom_call.1
= control target key start
LH: loop header
LB: loop body
LE: loop exit
PB: predicated region body
PF: predicated region fallthrough
CT: control target
= control target key end

     0   :  { %s1574_s0 = inlined_call_operand.hbm [shape: f32[2,8,32], index: 0, kind: input, shape index: {}]   ;;  %s1575_s1 = inlined_call_operand.hbm [shape: f32[2,1,32], index: 1, kind: input, shape index: {}]   ;;  %s1576_s2 = inlined_call_operand.vmem [shape: f32[2,1,32], index: 2, kind: input, shape index: {}]   ;;  %s1577_s3 = inlined_call_operand.hbm [shape: bf16[32,96], index: 3, kind: input, shape index: {}]   ;;  %s1578_s4 = inlined_call_operand.vmem [shape: f32[1,96], index: 4, kind: input, shape index: {}]   ;;  %s1579_s5 = inlined_call_operand.hbm [shape: bf16[2,4,8,8], index: 5, kind: output, shape index: {0}]   ;;  %s1580_s6 = inlined_call_operand.hbm [shape: bf16[2,4,8,8], index: 6, kind: output, shape index: {1}]   ;;  %s1581_s7 = inlined_call_operand.hbm [shape: bf16[2,4,8,8], index: 7, kind: output, shape index: {2}]  }
   0x1   :  { %1588 = sst [smem:[#allocation22_spill]] %s1574_s0 }
   0x2   :  { %1589 = sst [smem:[#allocation23_spill]] %s1577_s3 }
   0x3   :  { %13 = vsyncpa [#allocation3], 0 }
   0x4   :  { %15 = vsyncpa [#allocation3 + $0x1], 0 }
   0x5   :  { %16 = vsyncpa [#allocation6], 0 }
   0x6   :  { %18 = vsyncpa [#allocation6 + $0x1], 0 }
   0x7   :  { %19 = vsyncpa [#allocation4], 0 }
   0x8   :  { %21 = vsyncpa [#allocation4 + $0x1], 0 }
   0x9   :  { %22 = vsyncpa [#allocation10], 0 }
   0xa   :  { %24 = vsyncpa [#allocation10 + $0x1], 0  ;;  %s1254_s24 = smov 0   ;;  %s1256_s25 = smov 0  }
   0xb   :  { %s1258_s26 = smov 0   ;;  %s1260_s27 = smov 0  }
   0xc   :  { %s1262_s28 = smov 0   ;;  %s1264_s29 = smov 0  }
   0xd LB: > { %1590 = sst [smem:[#allocation17_spill]] %s1178_s26  ;;  %s1285_s30 = sadd.s32 4294967295, %s1190_s29   ;;  %s1190_s29 = sphi %s1264_s29, %s30_s29   ;;  %s1186_s28 = sphi %s1262_s28, %s1615_s28   ;;  %s1182_s27 = sphi %s1260_s27, %s1614_s27   ;;  %s1178_s26 = sphi %s1258_s26, %s1610_s26   ;;  %s1174_s25 = sphi %s1256_s25, %s1613_s25   ;;  %s1170_s24 = sphi %s1254_s24, %s1612_s24  }
   0xe   : > { %1591 = sst [smem:[#allocation18_spill]] %s1190_s29  ;;  %s1582_s8 = sadd.s32 4294967294, %s1190_s29  }
   0xf   : > { %p64_p0 = scmp.ne.s32.totalorder %s1174_s25, %s1170_s24  ;;  %p65_p1 = scmp.eq.s32.totalorder %s1285_s30, 0 }
  0x10   : > { %p190_p3 = scmp.eq.s32.totalorder %s1582_s8, 1  ;;  %p803_p5 = scmp.ge.s32.totalorder %s1190_s29, 1 }
  0x11   : > { %p1296_p4 = por %p65_p1, %p64_p0  ;;  %p253_p7 = scmp.lt.s32.totalorder %s1190_s29, 3 }
  0x12   : > { %p1301_p6 = por %p190_p3, %p64_p0  ;;  %s1192_s12 = smov [#allocation7]  }
  0x13   : > { %p1306_p8 = pnand %p803_p5, %p253_p7  ;;  %s265_s13 = sshll.u32 %s1192_s12, 4  ;;  %s266_s13 = int_to_ptr.vmem [resolvable:$true] %s265_s13 }
  0x14   : > { %s1593_s10 = scalar_select %p1301_p6, 1, 0 }
  0x15   : > { %p870_p9 = pneg %p1306_p8  ;;  %p805_p10 = scmp.ge.s32.totalorder %s1190_s29, 2 }
  0x16   : > { %1594 = sst [smem:[#allocation19_spill]] %s1593_s10  ;;  %s42_s15 = sadd.s32 1, %s1186_s28 }
  0x17   : > { %p1315_p11 = pnand %p870_p9, %p65_p1  ;;  %s975_s16 = scalar_lea.vmem %s266_s13, 256 }
  0x18   : > { %p976_p13 = scmp.ne.s32.totalorder %s266_s13, %s975_s16  ;;  %p983_p5 = scmp.lt.s32.totalorder %s266_s13, %s266_s13 }
  0x19   : > { %p966_p12 = pneg %p1315_p11  ;;  %p984_p7 = scmp.lt.s32.totalorder %s975_s16, %s975_s16 }
  0x1b   : > { %p978_p0 = pnand %p976_p13, %p966_p12  ;;  %p985_p2 = por %p984_p7, %p983_p5 }
  0x1d   : > { %p979_p3 = pneg %p978_p0 }
  0x1f   : > { %p986_p6 = pnand %p985_p2, %p979_p3 }
  0x21   : > { %989 = shalt.err (!%p986_p6)
}
  0x22   : > { %s1193_s17 = smov 64   ;;  %s1194_s18 = smov 4  }
  0x23   : > { %s1597_s3 = sld [smem:[#allocation23_spill]]  ;;  %p44_p2 = scmp.ge.s32.totalorder %s42_s15, 2 }
  0x24   : > { %s51_s21 = sadd.s32 1, %s1178_s26  ;;  %p58_p6 = scmp.ne.s32.totalorder %s1178_s26, %s1174_s25 }
  0x25   : > { %p59_p9 = scmp.eq.s32.totalorder %s1190_s29, 0  ;;  %s1617_s15 = smov (%p44_p2, %s42_s15), 0 }
  0x26   : > { %1598 = sst [smem:[#allocation20_spill]] %s1617_s15  ;;  %p1600_p13 = scmp.eq.s32.totalorder %s1285_s30, 1 }
  0x27   : > { %p1333_p12 = por %p59_p9, %p58_p6  ;;  %s46_s12 = ssub.s32 %s1186_s28, %s1617_s15 }
  0x28   : > { %p1339_p0 = por %p1600_p13, %p58_p6  ;;  %p49_p3 = scmp.eq.s32.totalorder %s46_s12, 0 }
  0x29   : > { %873 = dma.hbm_to_vmem [thread:$0]  (!%p1315_p11), %s1597_s3, 256, %s266_s13, [#allocation6], %s1193_s17, %s1193_s17, %s1194_s18  }
  0x2a   : > { %p892_p11 = scmp.lt.s32.totalorder %s1190_s29, 2  ;;  %s282_s13 = sand.u32 1, %s1178_s26  }
  0x2b   : > { %s806_s14 = sshll.u32 %s282_s13, 3  ;;  %s807_s17 = sshll.u32 %s1186_s28, 7 }
  0x2c   : > { %s1348_s16 = scalar_select %p49_p3, %s1178_s26, %s51_s21  }
  0x2d   : > { %s1603_s0 = sld [smem:[#allocation22_spill]]  ;;  %s286_s8 = scalar_lea.vmem [#allocation2], %s806_s14 }
  0x2e   : > { %1602 = sst [smem:[#allocation21_spill]] %s1348_s16  ;;  %s294_s3 = sshll.u32 %s286_s8, 4  ;;  %s295_s3 = int_to_ptr.vmem [resolvable:$true] %s294_s3 }
  0x2f   : > { %p1356_p5 = pnand %p892_p11, %p1333_p12  ;;  %s301_s12 = sand.u32 1, %s1190_s29  }
  0x30   : > { %s283_s15 = scalar_lea.sflag [#allocation3], %s282_s13  ;;  %s1003_s21 = scalar_lea.vmem %s295_s3, 128 }
  0x31   : > { %p992_p7 = pneg %p1356_p5  ;;  %p1004_p2 = scmp.ne.s32.totalorder %s295_s3, %s1003_s21 }
  0x32   : > { %s1195_s14 = smov [#allocation2]  }
  0x33   : > { %s292_s20 = scalar_lea.hbm %s1603_s0, %s807_s17  ;;  %p1006_p6 = pnand %p1004_p2, %p992_p7 }
  0x34   : > { %s1008_s8 = sshll.u32 %s1195_s14, 4  ;;  %s1009_s8 = int_to_ptr.vmem [resolvable:$false] %s1008_s8 }
  0x35   : > { %p1007_p9 = pneg %p1006_p6  ;;  %s1010_s22 = scalar_lea.vmem %s1009_s8, 256 }
  0x36   : > { %p1011_p12 = scmp.lt.s32.totalorder %s295_s3, %s1009_s8  ;;  %p1012_p13 = scmp.lt.s32.totalorder %s1010_s22, %s1003_s21 }
  0x38   : > { %p1013_p11 = por %p1012_p13, %p1011_p12 }
  0x3a   : > { %p1014_p3 = pnand %p1013_p11, %p1007_p9 }
  0x3c   : > { %1017 = shalt.err (!%p1014_p3)
}
  0x3d   : > { %877 = dma.hbm_to_vmem [thread:$0]  (!%p1356_p5), %s292_s20, 128, %s295_s3, %s283_s15  }
  0x3e   : > { %s808_s17 = sshll.u32 %s1186_s28, 4  ;;  %s304_s18 = scalar_lea.vmem [#allocation5], %s282_s13 }
  0x3f   : > { %s311_s19 = sshll.u32 %s304_s18, 4  ;;  %s309_s26 = scalar_lea.hbm %s1575_s1, %s808_s17  ;;  %s312_s19 = int_to_ptr.vmem [resolvable:$true] %s311_s19 }
  0x40   : > { %s302_s14 = scalar_lea.sflag [#allocation6], %s301_s12  ;;  %s1031_s29 = scalar_lea.vmem %s312_s19, 16 }
  0x41   : > { %p1032_p2 = scmp.ne.s32.totalorder %s312_s19, %s1031_s29  ;;  %s1196_s21 = smov [#allocation5]  }
  0x42   : > { %s1036_s8 = sshll.u32 %s1196_s21, 4  ;;  %s1037_s8 = int_to_ptr.vmem [resolvable:$false] %s1036_s8 }
  0x43   : > { %p1034_p6 = pnand %p1032_p2, %p992_p7  ;;  %s1038_s22 = scalar_lea.vmem %s1037_s8, 32 }
  0x44   : > { %p1039_p12 = scmp.lt.s32.totalorder %s312_s19, %s1037_s8  ;;  %p1040_p13 = scmp.lt.s32.totalorder %s1038_s22, %s1031_s29 }
  0x45   : > { %p1035_p9 = pneg %p1034_p6 }
  0x46   : > { %p1041_p11 = por %p1040_p13, %p1039_p12 }
  0x48   : > { %p1042_p3 = pnand %p1041_p11, %p1035_p9 }
  0x4a   : > { %1045 = shalt.err (!%p1042_p3)
}
  0x4b   : > { %880 = dma.hbm_to_vmem [thread:$0]  (!%p1356_p5), %s309_s26, 16, %s312_s19, %s302_s14  }
  0x4c   : > { %326 = sbr.rel (%p1306_p8) target bundleno = 778 (0x30a), region = 40  ;;  %s1380_s0 = sand.u32 (!%p1306_p8), 1, %s1174_s25  }
  0x4d   : > { %s810_s3 = sshll.u32 (!%p1306_p8), %s1380_s0, 3  ;;  %s329_s15 = scalar_lea.sflag (!%p1306_p8), [#allocation3], %s1380_s0 }
  0x4e   : > { %s332_s13 = scalar_lea.vmem (!%p1306_p8), [#allocation2], %s810_s3 }
  0x51   : > { %1149 = dma.done.wait (%p1296_p4), %s329_s15, 128  }
  0x52   : > { %1151 = vsyncadd (%p1296_p4), %s329_s15, 4294967168  ;;  %s337_s26 = sand.u32 1, %s1285_s30   ;;  %s340_s10 = scalar_lea.vmem [#allocation5], %s1380_s0 }
  0x53   : > { %s338_s29 = scalar_lea.sflag [#allocation6], %s337_s26 }
  0x54   : > { %1153 = dma.done.wait (%p1296_p4), %s338_s29, 16  }
  0x55   : > { %1155 = vsyncadd (%p1296_p4), %s338_s29, 4294967280 }
  0x56   : > { %1157 = dma.done.wait (%p65_p1), [#allocation6], 256  }
  0x57   : > { %1159 = vsyncadd (%p65_p1), [#allocation6], 4294967040  ;;  %vm399_vm0 = vcmask 261120   ;;  %v396_v0 = vld [vmem:[%s332_s13] sm:$0xff]  ;;  %v1197_v8 = vmov 0.0   ;;  %vm1198_vm1 = vmmov 0   ;;  %v416_v13 = vlaneseq }
  0x58   : > { %v400_v1 = vsel %vm399_vm0, %v396_v0, 0.0  ;;  %v960_v7 = vld [vmem:[#allocation7 + $0x8] sm:$0xff]   ;;  %848 = vmatprep.subr.bf16.mxu0 %v1197_v8  ;;  %852 = vmatprep.mubr.msk.bf16.mxu0 %vm1198_vm1, %v1197_v8  ;;  %v961_v9 = vld [vmem:[#allocation7] sm:$0xff]   ;;  %p392_p1 = scmp.lt.s32.totalorder %s1182_s27, 1  ;;  %s1414_s18 = sshll.u32 %s1380_s0, 4  ;;  %vm497_vm2 = vcmask 60416  }
  0x59   : > { %401 = vadd.xlane.f32.xlu0 %v400_v1  ;;  %849 = vmatpush3.bf16.msra.mxu0 %v960_v7  ;;  %v417_v14 = vshrl.u32 %v416_v13, 7  ;;  %v815_v21 = vld [vmem:[%s340_s10] ss:$0 sm:$0xff]  ;;  %s1199_s19 = smov 80   ;;  %s1200_s14 = smov 96  }
  0x5a   : > { %850 = vmatprep.subr.bf16.mxu0 %v1197_v8  ;;  %s393_s9 = scalar_select %p392_p1, %s1182_s27, 1  ;;  %v816_v25 = vld [vmem:[%s1578_s4] ss:$0 sm:$0xff] }
  0x5b   : > { %v418_v17 = vsub.s32 0, %v417_v14  ;;  %s1417_s21 = scalar_lea.vmem [#allocation8], %s1414_s18  ;;  %s1201_s8 = smov 104  }
  0x5c   : > { %s394_s20 = scalar_lea.vmem %s1576_s2, %s393_s9  ;;  %s1202_s22 = smov 88  }
  0x5d   : > { %851 = vmatpush3.bf16.msra.mxu0 %v961_v9  ;;  %v398_v15 = vld [vmem:[%s394_s20] sm:$0x1]  ;;  %s1203_s3 = smov 72   ;;  %s1204_s15 = smov 64  }
  0x5e   : > { %v414_v16 = vadd.f32 1.0, %v398_v15  ;;  %s1205_s13 = smov 120   ;;  %s1206_s29 = smov 56  }
  0x5f   : > { %s1207_s10 = smov 112   ;;  %s1208_s9 = smov 48  }
  0x60   : > { %v419_v18 = vrot.slane %v414_v16, %v418_v17  ;;  %s1209_s11 = smov 40   ;;  %s384_s16 = scalar_lea.vmem [#allocation9], %s1414_s18 }
  0x61   : > { %s597_s20 = sshll.u32 %s384_s16, 4  ;;  %s1426_s12 = sshll.u32 %s1182_s27, 8  ;;  %s1431_s20 = int_to_ptr.vmem [resolvable:$true] %s597_s20 }
  0x62   : > { %s1442_s27 = scalar_lea.sflag [#allocation10], %s337_s26 }
  0xe2   : > { %v402_v2 = vpop.xlane.xlu0 %401 }
  0xe3   : > { %v404_v3 = vmul.f32 0.03125, %v402_v2 }
  0xe5   : > { %v405_v4 = vsub.f32 %v396_v0, %v404_v3 }
  0xe7   : > { %v406_v5 = vmul.f32 %v405_v4, %v405_v4 }
  0xe9   : > { %v407_v6 = vsel %vm399_vm0, %v406_v5, 0.0 }
  0xea   : > { %408 = vadd.xlane.f32.xlu0 %v407_v6 }
 0x173   : > { %v409_v10 = vpop.xlane.xlu0 %408 }
 0x174   : > { %v410_v11 = vmul.f32 0.03125, %v409_v10 }
 0x176   : > { %v411_v12 = vadd.f32 1e-06, %v410_v11 }
 0x178   : > { %962 = vrsqrt.f32 %v411_v12 }
 0x185   : > { %v963_v19 = vpop.eup %962 }
 0x186   : > { %v413_v20 = vmul.f32 %v963_v19, %v405_v4 }
 0x188   : > { %v421_v22 = vmul.f32 %v419_v18, %v413_v20 }
 0x18a   : > { %v428_v23 = vadd.f32 %v815_v21, %v421_v22 }
 0x18c   : > { %v429_v24 = vpack.c.bf16 %v428_v23, %v428_v23 }
 0x18e   : > { %853 = vmatmul.mubr.msk.bf16.vlgmr.msra.gmra.mxu0 %vm399_vm0, %v429_v24 }
 0x24e   : > { %v490_v26 = vpop.f32.mrf.mxu0 }
 0x24f   : > { %v491_v27 = vadd.f32 %v816_v25, %v490_v26 }
 0x250   : > { %v854_v28 = vpop.f32.mrf.mxu0 }
 0x251   : > { %v496_v29 = vpack.c.bf16 %v491_v27, %v491_v27 }
 0x252   : > { %v493_v30 = vpop.f32.mrf.mxu0 }
 0x253   : > { %530 = vrot.lane.b32.xlu0 %v496_v29, %s1199_s19  ;;  %502 = vrot.lane.b32.xlu1 %v496_v29, %s1200_s14  ;;  %498 = vst.msk [vmem:[%s1417_s21] sm:$0xf] %vm497_vm2, %v496_v29  ;;  %s1437_s14 = scalar_lea.hbm %s1580_s6, %s1426_s12 }
 0x254   : > { %v855_v31 = vpop.f32.mrf.mxu0 }
 0x257   : > { %540 = vrot.lane.b32.xlu0 %v496_v29, %s1201_s8  ;;  %515 = vrot.lane.b32.xlu1 %v496_v29, %s1202_s22  ;;  %s1046_s8 = scalar_lea.vmem %s1431_s20, 256  ;;  %s1210_s22 = smov [#allocation9]  }
 0x258   : > { %p1047_p4 = scmp.ne.s32.totalorder %s1431_s20, %s1046_s8 }
 0x25a   : > { %p1048_p8 = pnand %p1047_p4, %p1339_p0 }
 0x25b   : > { %545 = vrot.lane.b32.xlu1 %v496_v29, %s1203_s3  ;;  %s1050_s3 = sshll.u32 %s1210_s22, 4  ;;  %s1051_s3 = int_to_ptr.vmem [resolvable:$false] %s1050_s3 }
 0x25c   : > { %p1049_p5 = pneg %p1048_p8  ;;  %p1053_p7 = scmp.lt.s32.totalorder %s1431_s20, %s1051_s3 }
 0x25f   : > { %506 = vrot.lane.b32.xlu1 %v496_v29, %s1204_s15 }
 0x263   : > { %510 = vrot.lane.b32.xlu1 %v496_v29, %s1205_s13  ;;  %s1052_s13 = scalar_lea.vmem %s1051_s3, 512 }
 0x264   : > { %p1054_p2 = scmp.lt.s32.totalorder %s1052_s13, %s1046_s8 }
 0x266   : > { %p1055_p6 = por %p1054_p2, %p1053_p7 }
 0x267   : > { %520 = vrot.lane.b32.xlu1 %v496_v29, %s1206_s29 }
 0x268   : > { %p1056_p9 = pnand %p1055_p6, %p1049_p5 }
 0x26b   : > { %525 = vrot.lane.b32.xlu1 %v496_v29, %s1207_s10 }
 0x26f   : > { %535 = vrot.lane.b32.xlu1 %v496_v29, %s1208_s9 }
 0x273   : > { %550 = vrot.lane.b32.xlu1 %v496_v29, %s1209_s11 }
 0x2c5   : > { %v531_v32 = vpop.permute.xlu0 %530  ;;  %v503_v33 = vpop.permute.xlu1 %502 }
 0x2c6   : > { %825 = vst.msk [vmem:[%s384_s16 + $0x8] sm:$0xf] %vm497_vm2, %v531_v32  ;;  %505 = vst.msk [vmem:[%s384_s16] sm:$0xf] %vm497_vm2, %v503_v33 }
 0x2c9   : > { %v541_v34 = vpop.permute.xlu0 %540  ;;  %v516_v35 = vpop.permute.xlu1 %515 }
 0x2ca   : > { %827 = vst.msk [vmem:[%s1417_s21 + $0xc] sm:$0xf] %vm497_vm2, %v541_v34  ;;  %822 = vst.msk [vmem:[%s384_s16 + $0x4] sm:$0xf] %vm497_vm2, %v516_v35 }
 0x2cd   : > { %v546_v36 = vpop.permute.xlu1 %545 }
 0x2ce   : > { %828 = vst.msk [vmem:[%s384_s16 + $0xc] sm:$0xf] %vm497_vm2, %v546_v36 }
 0x2cf   : > { %1059 = shalt.err (!%p1056_p9)
}
 0x2d0   : > { %s1060_s30 = scalar_lea.hbm %s1437_s14, 256  ;;  %s1064_s10 = scalar_lea.hbm %s1580_s6, 512 }
 0x2d1   : > { %p1061_p12 = scmp.ne.s32.totalorder %s1437_s14, %s1060_s30  ;;  %p1065_p3 = scmp.lt.s32.totalorder %s1437_s14, %s1580_s6 }
 0x2d2   : > { %p1066_p1 = scmp.lt.s32.totalorder %s1064_s10, %s1060_s30 }
 0x2d3   : > { %p1062_p13 = pnand %p1061_p12, %p1339_p0 }
 0x2d4   : > { %p1067_p4 = por %p1066_p1, %p1065_p3 }
 0x2d5   : > { %p1063_p11 = pneg %p1062_p13 }
 0x2d7   : > { %p1068_p8 = pnand %p1067_p4, %p1063_p11 }
 0x2d9   : > { %1071 = shalt.err (!%p1068_p8)
}
 0x2da   : > { %s1211_s16 = smov 4   ;;  %v507_v37 = vpop.permute.xlu1 %506  ;;  %s1469_s17 = scalar_lea.vmem [#allocation11], %s1414_s18 }
 0x2db   : > { %865 = dma.vmem_to_hbm [thread:$0]  (%p1339_p0), %s1431_s20, 256, %s1437_s14, %s1442_s27, %s1204_s15, %s1204_s15, %s1211_s16  }
 0x2dc   : > { %509 = vst.msk [vmem:[%s1469_s17] sm:$0xf] %vm497_vm2, %v507_v37  ;;  %s580_s19 = sshll.u32 %s1417_s21, 4  ;;  %s1484_s18 = scalar_lea.hbm %s1579_s5, %s1426_s12  ;;  %s1478_s19 = int_to_ptr.vmem [resolvable:$true] %s580_s19 }
 0x2dd   : > { %s556_s20 = scalar_lea.sflag [#allocation4], %s1380_s0  ;;  %s1072_s14 = scalar_lea.vmem %s1478_s19, 256 }
 0x2de   : > { %v511_v38 = vpop.permute.xlu1 %510  ;;  %p1073_p5 = scmp.ne.s32.totalorder %s1478_s19, %s1072_s14  ;;  %s1212_s3 = smov [#allocation8]  }
 0x2df   : > { %821 = vst.msk [vmem:[%s1417_s21 + $0x4] sm:$0xf] %vm497_vm2, %v511_v38  ;;  %s1076_s13 = sshll.u32 %s1212_s3, 4  ;;  %s1077_s13 = int_to_ptr.vmem [resolvable:$false] %s1076_s13 }
 0x2e0   : > { %p1074_p7 = pnand %p1073_p5, %p1339_p0  ;;  %s1078_s30 = scalar_lea.vmem %s1077_s13, 512 }
 0x2e1   : > { %p1079_p6 = scmp.lt.s32.totalorder %s1478_s19, %s1077_s13  ;;  %p1080_p9 = scmp.lt.s32.totalorder %s1078_s30, %s1072_s14 }
 0x2e2   : > { %v521_v39 = vpop.permute.xlu1 %520  ;;  %p1075_p2 = pneg %p1074_p7 }
 0x2e3   : > { %823 = vst.msk [vmem:[%s1469_s17 + $0x4] sm:$0xf] %vm497_vm2, %v521_v39  ;;  %p1081_p12 = por %p1080_p9, %p1079_p6 }
 0x2e5   : > { %p1082_p13 = pnand %p1081_p12, %p1075_p2 }
 0x2e6   : > { %v526_v40 = vpop.permute.xlu1 %525 }
 0x2e7   : > { %824 = vst.msk [vmem:[%s1417_s21 + $0x8] sm:$0xf] %vm497_vm2, %v526_v40 }
 0x2e8   : > { %1085 = shalt.err (!%p1082_p13)
}
 0x2e9   : > { %s1086_s21 = scalar_lea.hbm %s1484_s18, 256  ;;  %s1090_s29 = scalar_lea.hbm %s1579_s5, 512 }
 0x2ea   : > { %p1087_p11 = scmp.ne.s32.totalorder %s1484_s18, %s1086_s21  ;;  %p1091_p4 = scmp.lt.s32.totalorder %s1484_s18, %s1579_s5 }
 0x2eb   : > { %p1092_p8 = scmp.lt.s32.totalorder %s1090_s29, %s1086_s21 }
 0x2ec   : > { %p1088_p3 = pnand %p1087_p11, %p1339_p0 }
 0x2ed   : > { %p1093_p5 = por %p1092_p8, %p1091_p4 }
 0x2ee   : > { %p1089_p1 = pneg %p1088_p3 }
 0x2f0   : > { %p1094_p7 = pnand %p1093_p5, %p1089_p1 }
 0x2f2   : > { %1097 = shalt.err (!%p1094_p7)
}
 0x2f3   : > { %864 = dma.vmem_to_hbm [thread:$0]  (%p1339_p0), %s1478_s19, 256, %s1484_s18, %s556_s20, %s1204_s15, %s1204_s15, %s1211_s16   ;;  %v536_v41 = vpop.permute.xlu1 %535 }
 0x2f4   : > { %s614_s11 = sshll.u32 %s1469_s17, 4  ;;  %826 = vst.msk [vmem:[%s1469_s17 + $0x8] sm:$0xf] %vm497_vm2, %v536_v41  ;;  %s1521_s14 = scalar_lea.hbm %s1581_s7, %s1426_s12  ;;  %s1515_s11 = int_to_ptr.vmem [resolvable:$true] %s614_s11 }
 0x2f5   : > { %s1098_s3 = scalar_lea.vmem %s1515_s11, 256  ;;  %s1213_s19 = smov [#allocation11]  }
 0x2f6   : > { %p1099_p2 = scmp.ne.s32.totalorder %s1515_s11, %s1098_s3  ;;  %s1102_s18 = sshll.u32 %s1213_s19, 4  ;;  %s1103_s18 = int_to_ptr.vmem [resolvable:$false] %s1102_s18 }
 0x2f7   : > { %v551_v42 = vpop.permute.xlu1 %550  ;;  %s1104_s20 = scalar_lea.vmem %s1103_s18, 512  ;;  %p1105_p12 = scmp.lt.s32.totalorder %s1515_s11, %s1103_s18 }
 0x2f8   : > { %829 = vst.msk [vmem:[%s1469_s17 + $0xc] sm:$0xf] %vm497_vm2, %v551_v42  ;;  %p1100_p6 = pnand %p1099_p2, %p1339_p0  ;;  %p1106_p13 = scmp.lt.s32.totalorder %s1104_s20, %s1098_s3 }
 0x2fa   : > { %p1101_p9 = pneg %p1100_p6  ;;  %p1107_p11 = por %p1106_p13, %p1105_p12 }
 0x2fc   : > { %p1108_p3 = pnand %p1107_p11, %p1101_p9 }
 0x2fe   : > { %1111 = shalt.err (!%p1108_p3)
}
 0x2ff   : > { %s1112_s12 = scalar_lea.hbm %s1521_s14, 256  ;;  %s1116_s30 = scalar_lea.hbm %s1581_s7, 512 }
 0x300   : > { %p1113_p1 = scmp.ne.s32.totalorder %s1521_s14, %s1112_s12  ;;  %p1117_p5 = scmp.lt.s32.totalorder %s1521_s14, %s1581_s7 }
 0x301   : > { %p1118_p7 = scmp.lt.s32.totalorder %s1116_s30, %s1112_s12 }
 0x302   : > { %p1114_p4 = pnand %p1113_p1, %p1339_p0 }
 0x303   : > { %p1119_p2 = por %p1118_p7, %p1117_p5 }
 0x304   : > { %p1115_p8 = pneg %p1114_p4 }
 0x306   : > { %p1120_p6 = pnand %p1119_p2, %p1115_p8 }
 0x308   : > { %1123 = shalt.err (!%p1120_p6)
}
 0x309   : > { %866 = dma.vmem_to_hbm [thread:$0]  (%p1339_p0), %s1515_s11, 256, %s1521_s14, %s1442_s27, %s1204_s15, %s1204_s15, %s1211_s16  }
 0x30a PF: > { %s1605_s26 = sld [smem:[#allocation19_spill]]  ;;  %s629_s10 = sand.u32 1, %s1170_s24  }
 0x30b   : > { %s1606_s29 = sld [smem:[#allocation18_spill]]  ;;  %s630_s9 = scalar_lea.sflag [#allocation4], %s629_s10 }
 0x310   : > { %p1607_p9 = scmp.ne.s32.totalorder %s1605_s26, 0 }
 0x312   : > { %p882_p12 = pnand %p805_p10, %p1607_p9 }
 0x314   : > { %p883_p13 = pneg %p882_p12 }
 0x316   : > { %1161 = dma.done.wait (%p883_p13), %s630_s9, 256  }
 0x317   : > { %1163 = vsyncadd (%p883_p13), %s630_s9, 4294967040  ;;  %s1608_s23 = sadd.s32 4294967294, %s1606_s29  }
 0x318   : > { %s638_s8 = sand.u32 1, %s1608_s23  }
 0x319   : > { %s639_s22 = scalar_lea.sflag [#allocation10], %s638_s8 }
 0x31a   : > { %1165 = dma.done.wait (%p883_p13), %s639_s22, 512  }
 0x31b   : > { %1167 = vsyncadd (%p883_p13), %s639_s22, 4294966784  ;;  %s30_s29 = sadd.s32 1, %s1606_s29   ;;  %s1609_s15 = sld [smem:[#allocation17_spill]] }
 0x31c   : > { %p27_p0 = scmp.ge.s32.totalorder %s30_s29, 4   ;;  %s1610_s26 = sld [smem:[#allocation21_spill]] }
 0x31d   : > { %s1611_s16 = sld [smem:[#allocation20_spill]]  ;;  %s1612_s24 = smov %s1174_s25 }
 0x31e   : > { %s1614_s27 = smov %s1186_s28 }
 0x31f   :  { %29 = sbr.rel (!%p27_p0) target bundleno = 13 (0xd), region = 146 }
 0x321   : > { %s1613_s25 = smov %s1609_s15 }
 0x323   : > { %s1615_s28 = smov %s1611_s16 }
 0x324   :  { %653 = vsyncpa [#allocation3], 1 }
 0x325   :  { %655 = vsyncpa [#allocation3 + $0x1], 1 }
 0x326   :  { %656 = vsyncpa [#allocation6], 1 }
 0x327   :  { %658 = vsyncpa [#allocation6 + $0x1], 1 }
 0x328   :  { %659 = vsyncpa [#allocation4], 1 }
 0x329   :  { %661 = vsyncpa [#allocation4 + $0x1], 1 }
 0x32a   :  { %662 = vsyncpa [#allocation10], 1 }
 0x32b   :  { %664 = vsyncpa [#allocation10 + $0x1], 1 }

</bundles_post_ra>
